<compile_context>
chip_gen: v7x
topology: tpu7x:2x2x1
jax: 0.10.0
libtpu: 0.0.40
codegen_flags: <defaults>
</compile_context>

<pallas_src>
import functools
import math

import jax
import jax.numpy as jnp
from jax.experimental import pallas as pl
from jax.experimental.pallas import tpu as pltpu


# ----------------------------------------------------------------------------
# Kernel
# ----------------------------------------------------------------------------
def _layernorm(x, w, b, eps=1e-5):
    """LayerNorm in f32 (torch.nn.LayerNorm default eps)."""
    mu = jnp.mean(x, axis=-1, keepdims=True)
    xc = x - mu
    var = jnp.mean(xc * xc, axis=-1, keepdims=True)
    return xc * jax.lax.rsqrt(var + eps) * w + b


def fused_dtransformer_kernel(
        x_ref,                                    # (B*T, C)    f32 activations
        ln1w_ref, ln1b_ref, ln2w_ref, ln2b_ref,   # (1, C)      f32
        lnfw_ref, lnfb_ref,                       # (1, C)      f32
        wqkv_ref, bqkv_ref,                       # (C, 3C) bf16 / (1, 3C) f32
        wo_ref, bo_ref,                           # (H, dh, C) bf16 / (1, C) f32
        w1_ref, b1_ref,                           # (C, Hid) bf16 / (1, Hid) f32
        w2_ref, b2_ref,                           # (Hid, C) bf16 / (1, C) f32
        lmw_ref, lmb_ref,                         # (C, Vp) bf16 / (1, Vp) f32
        o_ref,                                    # (B*T, Vp)   f32 logits
        *, num_layers, num_heads, batch, seq):
    BT, C = x_ref.shape
    dh = C // num_heads
    bf16, f32 = jnp.bfloat16, jnp.float32

    # NOTE: the reference Attention divides by sqrt(K.size()[2]) which, after
    # the (B, H, T, dh) transpose, is sqrt(T) (sequence length), *not*
    # sqrt(head_dim).  Reproduced exactly.
    inv_scale = 1.0 / math.sqrt(seq)

    # Hoist all weight loads out of the layer loop; everything stays
    # VMEM / vreg resident across the N shared-weight decoder applications.
    ln1w, ln1b = ln1w_ref[...], ln1b_ref[...]
    ln2w, ln2b = ln2w_ref[...], ln2b_ref[...]
    lnfw, lnfb = lnfw_ref[...], lnfb_ref[...]
    wqkv, bqkv = wqkv_ref[...], bqkv_ref[...]
    bo = bo_ref[...]
    w1, b1 = w1_ref[...], b1_ref[...]
    w2, b2 = w2_ref[...], b2_ref[...]

    def decoder_block(x):
        # x = laynorm1(x)
        xn = _layernorm(x, ln1w, ln1b)                        # (BT, C) f32

        # Fused Q/K/V projection: one wide MXU push instead of three.
        qkv = jnp.dot(xn.astype(bf16), wqkv,
                      preferred_element_type=f32) + bqkv      # (BT, 3C) f32
        # vreg-preserving reshape (second-minor split aligned to sublane tile)
        qkv3 = qkv.reshape(batch, seq, 3 * C)                 # (B, T, 3C)

        # Multi-head self-attention, batched over B.  The reference forward
        # passes mask=None, so no masking is applied.
        # TODO(synk): additive mask branch (with the reference's in-place
        # `mask[mask == 1] = inf` mutation) not implemented.
        attn = jnp.zeros((BT, C), f32)
        for h in range(num_heads):                            # static, tiny dh
            lo = h * dh
            qh = qkv3[:, :, lo:lo + dh]                       # (B, T, dh)
            kh = qkv3[:, :, C + lo:C + lo + dh]
            vh = qkv3[:, :, 2 * C + lo:2 * C + lo + dh]
            s = jnp.einsum('bqd,bkd->bqk', qh.astype(bf16), kh.astype(bf16),
                           preferred_element_type=f32) * inv_scale
            s = s - jnp.max(s, axis=-1, keepdims=True)        # f32 softmax
            e = jnp.exp(s)
            p = e * pl.reciprocal(jnp.sum(e, axis=-1, keepdims=True),
                                  approx=True)
            oh = jnp.einsum('bqk,bkd->bqd', p.astype(bf16), vh.astype(bf16),
                            preferred_element_type=f32)       # (B, T, dh)
            # Fold the head-concat into the reprojection:
            #   concat_h(head_h) @ Wo == sum_h head_h @ Wo[h*dh:(h+1)*dh, :]
            attn = attn + jnp.dot(oh.reshape(BT, dh).astype(bf16), wo_ref[h],
                                  preferred_element_type=f32)
        attn = attn + bo

        # Residual around the *normalized* x, then LN2 (reference structure;
        # the cross-attention z-branch is skipped since z is None).
        x1 = xn + attn
        x2 = _layernorm(x1, ln2w, ln2b)

        # FeedForward: y = LN_f(x2); out = y + W2(relu(W1 y + b1)) + b2
        y = _layernorm(x2, lnfw, lnfb)
        h1 = jnp.dot(y.astype(bf16), w1, preferred_element_type=f32) + b1
        h1 = jnp.maximum(h1, 0.0)
        ff = jnp.dot(h1.astype(bf16), w2, preferred_element_type=f32) + b2
        return y + ff

    x = x_ref[...]
    # N applications of the SAME decoder (shared weights).  N is a small
    # static constant, so a fully-unrolled Python loop is used; weights stay
    # resident in VMEM the whole time.
    for _ in range(num_layers):
        x = decoder_block(x)

    # LanguageHead (probabilities=False -> plain linear).  Output last dim is
    # padded to a multiple of 128 lanes -> unmasked, lane-dense store.
    o_ref[...] = (jnp.dot(x.astype(bf16), lmw_ref[...],
                          preferred_element_type=f32) + lmb_ref[...])


# ----------------------------------------------------------------------------
# Wrapper (pallas_call plumbing)
# ----------------------------------------------------------------------------
_PARAM_ORDER = ("ln1w", "ln1b", "ln2w", "ln2b", "lnfw", "lnfb",
                "wqkv", "bqkv", "wo", "bo", "w1", "b1", "w2", "b2")


def _full_spec(shape):
    nd = len(shape)
    return pl.BlockSpec(shape, lambda i, _nd=nd: (0,) * _nd)


def dtransformer_forward(tkn_ids, params, *, N, num_heads, vocab_size):
    B, T = tkn_ids.shape
    C = params["tok_emb"].shape[1]
    Vp = params["lm_w"].shape[1]

    # Embedding: token-table gather + positional encoding (plain-JAX glue).
    # TODO(synk): the gather stays outside the kernel; a scalar-prefetch +
    # pl.Element row-gather BlockSpec could move it in at larger scales.
    x = params["tok_emb"][tkn_ids] + params["pos_enc"][None, :, :]
    x = x.reshape(B * T, C).astype(jnp.float32)       # (B*T, C) slab

    dec = params["decoder"]
    args = [x] + [dec[k] for k in _PARAM_ORDER] + [params["lm_w"], params["lm_b"]]
    in_specs = [_full_spec(a.shape) for a in args]

    # TODO(synk): at realistic sizes (large T, C, V) tile T flash-style, add a
    # vocab grid axis (TILE_V multiple of 128, parallel for megacore), and set
    # vmem_limit_bytes re-derived for v7x's 64 MiB VMEM; at these test shapes
    # everything fits comfortably in one VMEM-resident invocation.
    logits_padded = pl.pallas_call(
        functools.partial(fused_dtransformer_kernel,
                          num_layers=N, num_heads=num_heads, batch=B, seq=T),
        out_shape=jax.ShapeDtypeStruct((B * T, Vp), jnp.float32),
        grid=(1,),
        in_specs=in_specs,
        out_specs=pl.BlockSpec((B * T, Vp), lambda i: (0, 0)),
        compiler_params=pltpu.CompilerParams(
            dimension_semantics=("arbitrary",)),
    )(*args)

    return logits_padded.reshape(B, T, Vp)[:, :, :vocab_size]


# ----------------------------------------------------------------------------
# Parameter setup (deterministic, synthetic)
# ----------------------------------------------------------------------------
def positional_encoding(max_seq, embedding_dim):
    """PositionalEncoder from 'Attention is All You Need' (reference formula)."""
    pos = jnp.arange(max_seq, dtype=jnp.float32)[:, None]            # (T, 1)
    i = jnp.arange(embedding_dim // 2, dtype=jnp.float32)[None, :]   # (1, C/2)
    freq = 1.0 / (10000.0 ** (2.0 * i / embedding_dim))
    ang = pos * freq
    pe = jnp.zeros((max_seq, embedding_dim), jnp.float32)
    pe = pe.at[:, 0::2].set(jnp.sin(ang))
    pe = pe.at[:, 1::2].set(jnp.cos(ang))
    return pe


def init_params(key, vocab_size, embedding_dim, max_seq, factor, num_heads):
    C, Hid = embedding_dim, factor * embedding_dim
    dh = C // num_heads
    Vp = ((vocab_size + 127) // 128) * 128     # pad vocab -> lane-dense output
    keys = jax.random.split(key, 8)
    w = lambda k, shape: (0.02 * jax.random.normal(k, shape)).astype(jnp.float32)

    wq, wk, wv = w(keys[0], (C, C)), w(keys[1], (C, C)), w(keys[2], (C, C))
    wo = w(keys[3], (C, C))
    dec = {
        "ln1w": jnp.ones((1, C), jnp.float32), "ln1b": jnp.zeros((1, C), jnp.float32),
        "ln2w": jnp.ones((1, C), jnp.float32), "ln2b": jnp.zeros((1, C), jnp.float32),
        "lnfw": jnp.ones((1, C), jnp.float32), "lnfb": jnp.zeros((1, C), jnp.float32),
        # fused QKV weight (C, 3C): bf16 for the MXU, f32 bias added post-acc.
        "wqkv": jnp.concatenate([wq, wk, wv], axis=1).astype(jnp.bfloat16),
        "bqkv": jnp.zeros((1, 3 * C), jnp.float32),
        # output projection pre-split per head: (H, dh, C) so the kernel folds
        # the head-concat into per-head matmuls with simple leading-dim loads.
        "wo": wo.reshape(num_heads, dh, C).astype(jnp.bfloat16),
        "bo": jnp.zeros((1, C), jnp.float32),
        "w1": w(keys[4], (C, Hid)).astype(jnp.bfloat16),
        "b1": jnp.zeros((1, Hid), jnp.float32),
        "w2": w(keys[5], (Hid, C)).astype(jnp.bfloat16),
        "b2": jnp.zeros((1, C), jnp.float32),
    }
    lm_w = jnp.zeros((C, Vp), jnp.float32).at[:, :vocab_size].set(
        w(keys[6], (C, vocab_size)))
    return {
        "tok_emb": w(keys[7], (vocab_size, C)),
        "pos_enc": positional_encoding(max_seq, C),
        "decoder": dec,
        "lm_w": lm_w.astype(jnp.bfloat16),      # (C, Vp) padded, bf16
        "lm_b": jnp.zeros((1, Vp), jnp.float32),
    }


# ----------------------------------------------------------------------------
if __name__ == "__main__":
    N = 2
    embedding_dim = 32
    vocab_size = 64
    max_seq = 8
    num_heads = 4
    factor = 4
    batch = 2

    key = jax.random.PRNGKey(0)
    k_param, k_tok = jax.random.split(key)
    params = init_params(k_param, vocab_size, embedding_dim, max_seq, factor,
                         num_heads)
    tkn_ids = jax.random.randint(k_tok, (batch, max_seq), 0, vocab_size,
                                 dtype=jnp.int32)

    fwd = jax.jit(functools.partial(dtransformer_forward, N=N,
                                    num_heads=num_heads, vocab_size=vocab_size))
    logits = jax.block_until_ready(fwd(tkn_ids, params))
    assert logits.shape == (batch, max_seq, vocab_size)
    assert bool(jnp.all(jnp.isfinite(logits)))
    print("KERNEL_OK")
</pallas_src>

<mosaic_0001>
module attributes {stable_mosaic.version = 11 : i64} {
  func.func @fused_dtransformer_kernel(%arg0: i32, %arg1: memref<16x32xf32, #tpu.memory_space<vmem>>, %arg2: memref<1x32xf32, #tpu.memory_space<vmem>>, %arg3: memref<1x32xf32, #tpu.memory_space<vmem>>, %arg4: memref<1x32xf32, #tpu.memory_space<vmem>>, %arg5: memref<1x32xf32, #tpu.memory_space<vmem>>, %arg6: memref<1x32xf32, #tpu.memory_space<vmem>>, %arg7: memref<1x32xf32, #tpu.memory_space<vmem>>, %arg8: memref<32x96xbf16, #tpu.memory_space<vmem>>, %arg9: memref<1x96xf32, #tpu.memory_space<vmem>>, %arg10: memref<4x8x32xbf16, #tpu.memory_space<vmem>>, %arg11: memref<1x32xf32, #tpu.memory_space<vmem>>, %arg12: memref<32x128xbf16, #tpu.memory_space<vmem>>, %arg13: memref<1x128xf32, #tpu.memory_space<vmem>>, %arg14: memref<128x32xbf16, #tpu.memory_space<vmem>>, %arg15: memref<1x32xf32, #tpu.memory_space<vmem>>, %arg16: memref<32x128xbf16, #tpu.memory_space<vmem>>, %arg17: memref<1x128xf32, #tpu.memory_space<vmem>>, %arg18: memref<16x128xf32, #tpu.memory_space<vmem>>) attributes {dimension_semantics = [#tpu.dimension_semantics<arbitrary>], iteration_bounds = array<i64: 1>, scalar_prefetch = 0 : i64, scratch_operands = 0 : i64, tpu.core_type = #tpu.core_type<tc>, window_params = [{pipeline_mode = #tpu.pipeline_mode<synchronous>, transform_indices = @transform_0, window_bounds = array<i64: 16, 32>}, {pipeline_mode = #tpu.pipeline_mode<synchronous>, transform_indices = @transform_1, window_bounds = array<i64: 1, 32>}, {pipeline_mode = #tpu.pipeline_mode<synchronous>, transform_indices = @transform_2, window_bounds = array<i64: 1, 32>}, {pipeline_mode = #tpu.pipeline_mode<synchronous>, transform_indices = @transform_3, window_bounds = array<i64: 1, 32>}, {pipeline_mode = #tpu.pipeline_mode<synchronous>, transform_indices = @transform_4, window_bounds = array<i64: 1, 32>}, {pipeline_mode = #tpu.pipeline_mode<synchronous>, transform_indices = @transform_5, window_bounds = array<i64: 1, 32>}, {pipeline_mode = #tpu.pipeline_mode<synchronous>, transform_indices = @transform_6, window_bounds = array<i64: 1, 32>}, {pipeline_mode = #tpu.pipeline_mode<synchronous>, transform_indices = @transform_7, window_bounds = array<i64: 32, 96>}, {pipeline_mode = #tpu.pipeline_mode<synchronous>, transform_indices = @transform_8, window_bounds = array<i64: 1, 96>}, {pipeline_mode = #tpu.pipeline_mode<synchronous>, transform_indices = @transform_9, window_bounds = array<i64: 4, 8, 32>}, {pipeline_mode = #tpu.pipeline_mode<synchronous>, transform_indices = @transform_10, window_bounds = array<i64: 1, 32>}, {pipeline_mode = #tpu.pipeline_mode<synchronous>, transform_indices = @transform_11, window_bounds = array<i64: 32, 128>}, {pipeline_mode = #tpu.pipeline_mode<synchronous>, transform_indices = @transform_12, window_bounds = array<i64: 1, 128>}, {pipeline_mode = #tpu.pipeline_mode<synchronous>, transform_indices = @transform_13, window_bounds = array<i64: 128, 32>}, {pipeline_mode = #tpu.pipeline_mode<synchronous>, transform_indices = @transform_14, window_bounds = array<i64: 1, 32>}, {pipeline_mode = #tpu.pipeline_mode<synchronous>, transform_indices = @transform_15, window_bounds = array<i64: 32, 128>}, {pipeline_mode = #tpu.pipeline_mode<synchronous>, transform_indices = @transform_16, window_bounds = array<i64: 1, 128>}, {pipeline_mode = #tpu.pipeline_mode<synchronous>, transform_indices = @transform_17, window_bounds = array<i64: 16, 128>}]} {
    %c0 = arith.constant 0 : index
    %c0_0 = arith.constant 0 : index
    %0 = vector.load %arg2[%c0, %c0_0] : memref<1x32xf32, #tpu.memory_space<vmem>>, vector<1x32xf32>
    %c0_1 = arith.constant 0 : index
    %c0_2 = arith.constant 0 : index
    %1 = vector.load %arg3[%c0_1, %c0_2] : memref<1x32xf32, #tpu.memory_space<vmem>>, vector<1x32xf32>
    %c0_3 = arith.constant 0 : index
    %c0_4 = arith.constant 0 : index
    %2 = vector.load %arg4[%c0_3, %c0_4] : memref<1x32xf32, #tpu.memory_space<vmem>>, vector<1x32xf32>
    %c0_5 = arith.constant 0 : index
    %c0_6 = arith.constant 0 : index
    %3 = vector.load %arg5[%c0_5, %c0_6] : memref<1x32xf32, #tpu.memory_space<vmem>>, vector<1x32xf32>
    %c0_7 = arith.constant 0 : index
    %c0_8 = arith.constant 0 : index
    %4 = vector.load %arg6[%c0_7, %c0_8] : memref<1x32xf32, #tpu.memory_space<vmem>>, vector<1x32xf32>
    %c0_9 = arith.constant 0 : index
    %c0_10 = arith.constant 0 : index
    %5 = vector.load %arg7[%c0_9, %c0_10] : memref<1x32xf32, #tpu.memory_space<vmem>>, vector<1x32xf32>
    %c0_11 = arith.constant 0 : index
    %c0_12 = arith.constant 0 : index
    %6 = vector.load %arg8[%c0_11, %c0_12] : memref<32x96xbf16, #tpu.memory_space<vmem>>, vector<32x96xbf16>
    %c0_13 = arith.constant 0 : index
    %c0_14 = arith.constant 0 : index
    %7 = vector.load %arg9[%c0_13, %c0_14] : memref<1x96xf32, #tpu.memory_space<vmem>>, vector<1x96xf32>
    %c0_15 = arith.constant 0 : index
    %c0_16 = arith.constant 0 : index
    %8 = vector.load %arg11[%c0_15, %c0_16] : memref<1x32xf32, #tpu.memory_space<vmem>>, vector<1x32xf32>
    %c0_17 = arith.constant 0 : index
    %c0_18 = arith.constant 0 : index
    %9 = vector.load %arg12[%c0_17, %c0_18] : memref<32x128xbf16, #tpu.memory_space<vmem>>, vector<32x128xbf16>
    %c0_19 = arith.constant 0 : index
    %c0_20 = arith.constant 0 : index
    %10 = vector.load %arg13[%c0_19, %c0_20] : memref<1x128xf32, #tpu.memory_space<vmem>>, vector<1x128xf32>
    %c0_21 = arith.constant 0 : index
    %c0_22 = arith.constant 0 : index
    %11 = vector.load %arg14[%c0_21, %c0_22] : memref<128x32xbf16, #tpu.memory_space<vmem>>, vector<128x32xbf16>
    %c0_23 = arith.constant 0 : index
    %c0_24 = arith.constant 0 : index
    %12 = vector.load %arg15[%c0_23, %c0_24] : memref<1x32xf32, #tpu.memory_space<vmem>>, vector<1x32xf32>
    %c0_25 = arith.constant 0 : index
    %c0_26 = arith.constant 0 : index
    %13 = vector.load %arg1[%c0_25, %c0_26] : memref<16x32xf32, #tpu.memory_space<vmem>>, vector<16x32xf32>
    %cst = arith.constant dense<0.000000e+00> : vector<16xf32>
    %14 = vector.multi_reduction <add>, %13, %cst [1] : vector<16x32xf32> to vector<16xf32>
    %15 = vector.shape_cast %14 : vector<16xf32> to vector<16x1xf32>
    %cst_27 = arith.constant 3.200000e+01 : f32
    %16 = vector.broadcast %cst_27 : f32 to vector<16x1xf32>
    %17 = arith.divf %15, %16 : vector<16x1xf32>
    %18 = vector.broadcast %17 : vector<16x1xf32> to vector<16x32xf32>
    %19 = arith.subf %13, %18 : vector<16x32xf32>
    %20 = arith.mulf %19, %19 : vector<16x32xf32>
    %cst_28 = arith.constant dense<0.000000e+00> : vector<16xf32>
    %21 = vector.multi_reduction <add>, %20, %cst_28 [1] : vector<16x32xf32> to vector<16xf32>
    %22 = vector.shape_cast %21 : vector<16xf32> to vector<16x1xf32>
    %cst_29 = arith.constant 3.200000e+01 : f32
    %23 = vector.broadcast %cst_29 : f32 to vector<16x1xf32>
    %24 = arith.divf %22, %23 : vector<16x1xf32>
    %cst_30 = arith.constant 9.99999974E-6 : f32
    %25 = vector.broadcast %cst_30 : f32 to vector<16x1xf32>
    %26 = arith.addf %24, %25 : vector<16x1xf32>
    %27 = math.rsqrt %26 : vector<16x1xf32>
    %28 = vector.broadcast %27 : vector<16x1xf32> to vector<16x32xf32>
    %29 = arith.mulf %19, %28 : vector<16x32xf32>
    %30 = vector.broadcast %0 : vector<1x32xf32> to vector<16x32xf32>
    %31 = arith.mulf %29, %30 : vector<16x32xf32>
    %32 = vector.broadcast %1 : vector<1x32xf32> to vector<16x32xf32>
    %33 = arith.addf %31, %32 : vector<16x32xf32>
    %34 = arith.truncf %33 : vector<16x32xf32> to vector<16x32xbf16>
    %cst_31 = arith.constant dense<0.000000e+00> : vector<16x96xf32>
    %35 = tpu.matmul %34, %6, %cst_31 {dimension_numbers = #tpu.dot_dimension_numbers<[1], [0], [0], [1], [0, 0, 1, 1], [], []>} : vector<16x32xbf16>, vector<32x96xbf16>, vector<16x96xf32> -> vector<16x96xf32>
    %36 = vector.broadcast %7 : vector<1x96xf32> to vector<16x96xf32>
    %37 = arith.addf %35, %36 : vector<16x96xf32>
    %38 = vector.shape_cast %37 : vector<16x96xf32> to vector<2x8x96xf32>
    %cst_32 = arith.constant 0.000000e+00 : f32
    %39 = vector.broadcast %cst_32 : f32 to vector<16x32xf32>
    %40 = vector.extract_strided_slice %38 {offsets = [0, 0, 0], sizes = [2, 8, 8], strides = [1, 1, 1]} : vector<2x8x96xf32> to vector<2x8x8xf32>
    %41 = vector.extract_strided_slice %38 {offsets = [0, 0, 32], sizes = [2, 8, 8], strides = [1, 1, 1]} : vector<2x8x96xf32> to vector<2x8x8xf32>
    %42 = vector.extract_strided_slice %38 {offsets = [0, 0, 64], sizes = [2, 8, 8], strides = [1, 1, 1]} : vector<2x8x96xf32> to vector<2x8x8xf32>
    %43 = arith.truncf %40 : vector<2x8x8xf32> to vector<2x8x8xbf16>
    %44 = arith.truncf %41 : vector<2x8x8xf32> to vector<2x8x8xbf16>
    "tpu.trace_start"() <{level = 10 : i32, message = "bqd,bkd->bqk"}> : () -> ()
    %cst_33 = arith.constant dense<0.000000e+00> : vector<2x8x8xf32>
    %45 = tpu.matmul %43, %44, %cst_33 {dimension_numbers = #tpu.dot_dimension_numbers<[2], [2], [1], [1], [0, 0, 0, 1, 1, 1], [0], [0]>} : vector<2x8x8xbf16>, vector<2x8x8xbf16>, vector<2x8x8xf32> -> vector<2x8x8xf32>
    "tpu.trace_stop"() : () -> ()
    %cst_34 = arith.constant 0.353553385 : f32
    %46 = vector.broadcast %cst_34 : f32 to vector<2x8x8xf32>
    %47 = arith.mulf %45, %46 : vector<2x8x8xf32>
    %cst_35 = arith.constant dense<0xFF800000> : vector<2x8xf32>
    %48 = vector.multi_reduction <maximumf>, %47, %cst_35 [2] : vector<2x8x8xf32> to vector<2x8xf32>
    %49 = vector.shape_cast %48 : vector<2x8xf32> to vector<2x8x1xf32>
    %50 = vector.broadcast %49 : vector<2x8x1xf32> to vector<2x8x8xf32>
    %51 = arith.subf %47, %50 : vector<2x8x8xf32>
    %52 = math.exp %51 : vector<2x8x8xf32>
    %cst_36 = arith.constant dense<0.000000e+00> : vector<2x8xf32>
    %53 = vector.multi_reduction <add>, %52, %cst_36 [2] : vector<2x8x8xf32> to vector<2x8xf32>
    %54 = vector.shape_cast %53 : vector<2x8xf32> to vector<2x8x1xf32>
    %55 = tpu.reciprocal %54 {approx = true} : vector<2x8x1xf32> -> vector<2x8x1xf32>
    %56 = vector.broadcast %55 : vector<2x8x1xf32> to vector<2x8x8xf32>
    %57 = arith.mulf %52, %56 : vector<2x8x8xf32>
    %58 = arith.truncf %57 : vector<2x8x8xf32> to vector<2x8x8xbf16>
    %59 = arith.truncf %42 : vector<2x8x8xf32> to vector<2x8x8xbf16>
    "tpu.trace_start"() <{level = 10 : i32, message = "bqk,bkd->bqd"}> : () -> ()
    %cst_37 = arith.constant dense<0.000000e+00> : vector<2x8x8xf32>
    %60 = tpu.matmul %58, %59, %cst_37 {dimension_numbers = #tpu.dot_dimension_numbers<[2], [1], [1], [2], [0, 0, 0, 1, 1, 2], [0], [0]>} : vector<2x8x8xbf16>, vector<2x8x8xbf16>, vector<2x8x8xf32> -> vector<2x8x8xf32>
    "tpu.trace_stop"() : () -> ()
    %61 = vector.shape_cast %60 : vector<2x8x8xf32> to vector<16x8xf32>
    %62 = arith.truncf %61 : vector<16x8xf32> to vector<16x8xbf16>
    %c0_38 = arith.constant 0 : index
    %c0_39 = arith.constant 0 : index
    %c0_40 = arith.constant 0 : index
    %63 = vector.load %arg10[%c0_38, %c0_39, %c0_40] : memref<4x8x32xbf16, #tpu.memory_space<vmem>>, vector<1x8x32xbf16>
    %64 = vector.shape_cast %63 : vector<1x8x32xbf16> to vector<8x32xbf16>
    %cst_41 = arith.constant dense<0.000000e+00> : vector<16x32xf32>
    %65 = tpu.matmul %62, %64, %cst_41 {dimension_numbers = #tpu.dot_dimension_numbers<[1], [0], [0], [1], [0, 0, 1, 1], [], []>} : vector<16x8xbf16>, vector<8x32xbf16>, vector<16x32xf32> -> vector<16x32xf32>
    %66 = arith.addf %39, %65 : vector<16x32xf32>
    %67 = vector.extract_strided_slice %38 {offsets = [0, 0, 8], sizes = [2, 8, 8], strides = [1, 1, 1]} : vector<2x8x96xf32> to vector<2x8x8xf32>
    %68 = vector.extract_strided_slice %38 {offsets = [0, 0, 40], sizes = [2, 8, 8], strides = [1, 1, 1]} : vector<2x8x96xf32> to vector<2x8x8xf32>
    %69 = vector.extract_strided_slice %38 {offsets = [0, 0, 72], sizes = [2, 8, 8], strides = [1, 1, 1]} : vector<2x8x96xf32> to vector<2x8x8xf32>
    %70 = arith.truncf %67 : vector<2x8x8xf32> to vector<2x8x8xbf16>
    %71 = arith.truncf %68 : vector<2x8x8xf32> to vector<2x8x8xbf16>
    "tpu.trace_start"() <{level = 10 : i32, message = "bqd,bkd->bqk"}> : () -> ()
    %cst_42 = arith.constant dense<0.000000e+00> : vector<2x8x8xf32>
    %72 = tpu.matmul %70, %71, %cst_42 {dimension_numbers = #tpu.dot_dimension_numbers<[2], [2], [1], [1], [0, 0, 0, 1, 1, 1], [0], [0]>} : vector<2x8x8xbf16>, vector<2x8x8xbf16>, vector<2x8x8xf32> -> vector<2x8x8xf32>
    "tpu.trace_stop"() : () -> ()
    %cst_43 = arith.constant 0.353553385 : f32
    %73 = vector.broadcast %cst_43 : f32 to vector<2x8x8xf32>
    %74 = arith.mulf %72, %73 : vector<2x8x8xf32>
    %cst_44 = arith.constant dense<0xFF800000> : vector<2x8xf32>
    %75 = vector.multi_reduction <maximumf>, %74, %cst_44 [2] : vector<2x8x8xf32> to vector<2x8xf32>
    %76 = vector.shape_cast %75 : vector<2x8xf32> to vector<2x8x1xf32>
    %77 = vector.broadcast %76 : vector<2x8x1xf32> to vector<2x8x8xf32>
    %78 = arith.subf %74, %77 : vector<2x8x8xf32>
    %79 = math.exp %78 : vector<2x8x8xf32>
    %cst_45 = arith.constant dense<0.000000e+00> : vector<2x8xf32>
    %80 = vector.multi_reduction <add>, %79, %cst_45 [2] : vector<2x8x8xf32> to vector<2x8xf32>
    %81 = vector.shape_cast %80 : vector<2x8xf32> to vector<2x8x1xf32>
    %82 = tpu.reciprocal %81 {approx = true} : vector<2x8x1xf32> -> vector<2x8x1xf32>
    %83 = vector.broadcast %82 : vector<2x8x1xf32> to vector<2x8x8xf32>
    %84 = arith.mulf %79, %83 : vector<2x8x8xf32>
    %85 = arith.truncf %84 : vector<2x8x8xf32> to vector<2x8x8xbf16>
    %86 = arith.truncf %69 : vector<2x8x8xf32> to vector<2x8x8xbf16>
    "tpu.trace_start"() <{level = 10 : i32, message = "bqk,bkd->bqd"}> : () -> ()
    %cst_46 = arith.constant dense<0.000000e+00> : vector<2x8x8xf32>
    %87 = tpu.matmul %85, %86, %cst_46 {dimension_numbers = #tpu.dot_dimension_numbers<[2], [1], [1], [2], [0, 0, 0, 1, 1, 2], [0], [0]>} : vector<2x8x8xbf16>, vector<2x8x8xbf16>, vector<2x8x8xf32> -> vector<2x8x8xf32>
    "tpu.trace_stop"() : () -> ()
    %88 = vector.shape_cast %87 : vector<2x8x8xf32> to vector<16x8xf32>
    %89 = arith.truncf %88 : vector<16x8xf32> to vector<16x8xbf16>
    %c1 = arith.constant 1 : index
    %c0_47 = arith.constant 0 : index
    %c0_48 = arith.constant 0 : index
    %90 = vector.load %arg10[%c1, %c0_47, %c0_48] : memref<4x8x32xbf16, #tpu.memory_space<vmem>>, vector<1x8x32xbf16>
    %91 = vector.shape_cast %90 : vector<1x8x32xbf16> to vector<8x32xbf16>
    %cst_49 = arith.constant dense<0.000000e+00> : vector<16x32xf32>
    %92 = tpu.matmul %89, %91, %cst_49 {dimension_numbers = #tpu.dot_dimension_numbers<[1], [0], [0], [1], [0, 0, 1, 1], [], []>} : vector<16x8xbf16>, vector<8x32xbf16>, vector<16x32xf32> -> vector<16x32xf32>
    %93 = arith.addf %66, %92 : vector<16x32xf32>
    %94 = vector.extract_strided_slice %38 {offsets = [0, 0, 16], sizes = [2, 8, 8], strides = [1, 1, 1]} : vector<2x8x96xf32> to vector<2x8x8xf32>
    %95 = vector.extract_strided_slice %38 {offsets = [0, 0, 48], sizes = [2, 8, 8], strides = [1, 1, 1]} : vector<2x8x96xf32> to vector<2x8x8xf32>
    %96 = vector.extract_strided_slice %38 {offsets = [0, 0, 80], sizes = [2, 8, 8], strides = [1, 1, 1]} : vector<2x8x96xf32> to vector<2x8x8xf32>
    %97 = arith.truncf %94 : vector<2x8x8xf32> to vector<2x8x8xbf16>
    %98 = arith.truncf %95 : vector<2x8x8xf32> to vector<2x8x8xbf16>
    "tpu.trace_start"() <{level = 10 : i32, message = "bqd,bkd->bqk"}> : () -> ()
    %cst_50 = arith.constant dense<0.000000e+00> : vector<2x8x8xf32>
    %99 = tpu.matmul %97, %98, %cst_50 {dimension_numbers = #tpu.dot_dimension_numbers<[2], [2], [1], [1], [0, 0, 0, 1, 1, 1], [0], [0]>} : vector<2x8x8xbf16>, vector<2x8x8xbf16>, vector<2x8x8xf32> -> vector<2x8x8xf32>
    "tpu.trace_stop"() : () -> ()
    %cst_51 = arith.constant 0.353553385 : f32
    %100 = vector.broadcast %cst_51 : f32 to vector<2x8x8xf32>
    %101 = arith.mulf %99, %100 : vector<2x8x8xf32>
    %cst_52 = arith.constant dense<0xFF800000> : vector<2x8xf32>
    %102 = vector.multi_reduction <maximumf>, %101, %cst_52 [2] : vector<2x8x8xf32> to vector<2x8xf32>
    %103 = vector.shape_cast %102 : vector<2x8xf32> to vector<2x8x1xf32>
    %104 = vector.broadcast %103 : vector<2x8x1xf32> to vector<2x8x8xf32>
    %105 = arith.subf %101, %104 : vector<2x8x8xf32>
    %106 = math.exp %105 : vector<2x8x8xf32>
    %cst_53 = arith.constant dense<0.000000e+00> : vector<2x8xf32>
    %107 = vector.multi_reduction <add>, %106, %cst_53 [2] : vector<2x8x8xf32> to vector<2x8xf32>
    %108 = vector.shape_cast %107 : vector<2x8xf32> to vector<2x8x1xf32>
    %109 = tpu.reciprocal %108 {approx = true} : vector<2x8x1xf32> -> vector<2x8x1xf32>
    %110 = vector.broadcast %109 : vector<2x8x1xf32> to vector<2x8x8xf32>
    %111 = arith.mulf %106, %110 : vector<2x8x8xf32>
    %112 = arith.truncf %111 : vector<2x8x8xf32> to vector<2x8x8xbf16>
    %113 = arith.truncf %96 : vector<2x8x8xf32> to vector<2x8x8xbf16>
    "tpu.trace_start"() <{level = 10 : i32, message = "bqk,bkd->bqd"}> : () -> ()
    %cst_54 = arith.constant dense<0.000000e+00> : vector<2x8x8xf32>
    %114 = tpu.matmul %112, %113, %cst_54 {dimension_numbers = #tpu.dot_dimension_numbers<[2], [1], [1], [2], [0, 0, 0, 1, 1, 2], [0], [0]>} : vector<2x8x8xbf16>, vector<2x8x8xbf16>, vector<2x8x8xf32> -> vector<2x8x8xf32>
    "tpu.trace_stop"() : () -> ()
    %115 = vector.shape_cast %114 : vector<2x8x8xf32> to vector<16x8xf32>
    %116 = arith.truncf %115 : vector<16x8xf32> to vector<16x8xbf16>
    %c2 = arith.constant 2 : index
    %c0_55 = arith.constant 0 : index
    %c0_56 = arith.constant 0 : index
    %117 = vector.load %arg10[%c2, %c0_55, %c0_56] : memref<4x8x32xbf16, #tpu.memory_space<vmem>>, vector<1x8x32xbf16>
    %118 = vector.shape_cast %117 : vector<1x8x32xbf16> to vector<8x32xbf16>
    %cst_57 = arith.constant dense<0.000000e+00> : vector<16x32xf32>
    %119 = tpu.matmul %116, %118, %cst_57 {dimension_numbers = #tpu.dot_dimension_numbers<[1], [0], [0], [1], [0, 0, 1, 1], [], []>} : vector<16x8xbf16>, vector<8x32xbf16>, vector<16x32xf32> -> vector<16x32xf32>
    %120 = arith.addf %93, %119 : vector<16x32xf32>
    %121 = vector.extract_strided_slice %38 {offsets = [0, 0, 24], sizes = [2, 8, 8], strides = [1, 1, 1]} : vector<2x8x96xf32> to vector<2x8x8xf32>
    %122 = vector.extract_strided_slice %38 {offsets = [0, 0, 56], sizes = [2, 8, 8], strides = [1, 1, 1]} : vector<2x8x96xf32> to vector<2x8x8xf32>
    %123 = vector.extract_strided_slice %38 {offsets = [0, 0, 88], sizes = [2, 8, 8], strides = [1, 1, 1]} : vector<2x8x96xf32> to vector<2x8x8xf32>
    %124 = arith.truncf %121 : vector<2x8x8xf32> to vector<2x8x8xbf16>
    %125 = arith.truncf %122 : vector<2x8x8xf32> to vector<2x8x8xbf16>
    "tpu.trace_start"() <{level = 10 : i32, message = "bqd,bkd->bqk"}> : () -> ()
    %cst_58 = arith.constant dense<0.000000e+00> : vector<2x8x8xf32>
    %126 = tpu.matmul %124, %125, %cst_58 {dimension_numbers = #tpu.dot_dimension_numbers<[2], [2], [1], [1], [0, 0, 0, 1, 1, 1], [0], [0]>} : vector<2x8x8xbf16>, vector<2x8x8xbf16>, vector<2x8x8xf32> -> vector<2x8x8xf32>
    "tpu.trace_stop"() : () -> ()
    %cst_59 = arith.constant 0.353553385 : f32
    %127 = vector.broadcast %cst_59 : f32 to vector<2x8x8xf32>
    %128 = arith.mulf %126, %127 : vector<2x8x8xf32>
    %cst_60 = arith.constant dense<0xFF800000> : vector<2x8xf32>
    %129 = vector.multi_reduction <maximumf>, %128, %cst_60 [2] : vector<2x8x8xf32> to vector<2x8xf32>
    %130 = vector.shape_cast %129 : vector<2x8xf32> to vector<2x8x1xf32>
    %131 = vector.broadcast %130 : vector<2x8x1xf32> to vector<2x8x8xf32>
    %132 = arith.subf %128, %131 : vector<2x8x8xf32>
    %133 = math.exp %132 : vector<2x8x8xf32>
    %cst_61 = arith.constant dense<0.000000e+00> : vector<2x8xf32>
    %134 = vector.multi_reduction <add>, %133, %cst_61 [2] : vector<2x8x8xf32> to vector<2x8xf32>
    %135 = vector.shape_cast %134 : vector<2x8xf32> to vector<2x8x1xf32>
    %136 = tpu.reciprocal %135 {approx = true} : vector<2x8x1xf32> -> vector<2x8x1xf32>
    %137 = vector.broadcast %136 : vector<2x8x1xf32> to vector<2x8x8xf32>
    %138 = arith.mulf %133, %137 : vector<2x8x8xf32>
    %139 = arith.truncf %138 : vector<2x8x8xf32> to vector<2x8x8xbf16>
    %140 = arith.truncf %123 : vector<2x8x8xf32> to vector<2x8x8xbf16>
    "tpu.trace_start"() <{level = 10 : i32, message = "bqk,bkd->bqd"}> : () -> ()
    %cst_62 = arith.constant dense<0.000000e+00> : vector<2x8x8xf32>
    %141 = tpu.matmul %139, %140, %cst_62 {dimension_numbers = #tpu.dot_dimension_numbers<[2], [1], [1], [2], [0, 0, 0, 1, 1, 2], [0], [0]>} : vector<2x8x8xbf16>, vector<2x8x8xbf16>, vector<2x8x8xf32> -> vector<2x8x8xf32>
    "tpu.trace_stop"() : () -> ()
    %142 = vector.shape_cast %141 : vector<2x8x8xf32> to vector<16x8xf32>
    %143 = arith.truncf %142 : vector<16x8xf32> to vector<16x8xbf16>
    %c3 = arith.constant 3 : index
    %c0_63 = arith.constant 0 : index
    %c0_64 = arith.constant 0 : index
    %144 = vector.load %arg10[%c3, %c0_63, %c0_64] : memref<4x8x32xbf16, #tpu.memory_space<vmem>>, vector<1x8x32xbf16>
    %145 = vector.shape_cast %144 : vector<1x8x32xbf16> to vector<8x32xbf16>
    %cst_65 = arith.constant dense<0.000000e+00> : vector<16x32xf32>
    %146 = tpu.matmul %143, %145, %cst_65 {dimension_numbers = #tpu.dot_dimension_numbers<[1], [0], [0], [1], [0, 0, 1, 1], [], []>} : vector<16x8xbf16>, vector<8x32xbf16>, vector<16x32xf32> -> vector<16x32xf32>
    %147 = arith.addf %120, %146 : vector<16x32xf32>
    %148 = vector.broadcast %8 : vector<1x32xf32> to vector<16x32xf32>
    %149 = arith.addf %147, %148 : vector<16x32xf32>
    %150 = arith.addf %33, %149 : vector<16x32xf32>
    %cst_66 = arith.constant dense<0.000000e+00> : vector<16xf32>
    %151 = vector.multi_reduction <add>, %150, %cst_66 [1] : vector<16x32xf32> to vector<16xf32>
    %152 = vector.shape_cast %151 : vector<16xf32> to vector<16x1xf32>
    %cst_67 = arith.constant 3.200000e+01 : f32
    %153 = vector.broadcast %cst_67 : f32 to vector<16x1xf32>
    %154 = arith.divf %152, %153 : vector<16x1xf32>
    %155 = vector.broadcast %154 : vector<16x1xf32> to vector<16x32xf32>
    %156 = arith.subf %150, %155 : vector<16x32xf32>
    %157 = arith.mulf %156, %156 : vector<16x32xf32>
    %cst_68 = arith.constant dense<0.000000e+00> : vector<16xf32>
    %158 = vector.multi_reduction <add>, %157, %cst_68 [1] : vector<16x32xf32> to vector<16xf32>
    %159 = vector.shape_cast %158 : vector<16xf32> to vector<16x1xf32>
    %cst_69 = arith.constant 3.200000e+01 : f32
    %160 = vector.broadcast %cst_69 : f32 to vector<16x1xf32>
    %161 = arith.divf %159, %160 : vector<16x1xf32>
    %cst_70 = arith.constant 9.99999974E-6 : f32
    %162 = vector.broadcast %cst_70 : f32 to vector<16x1xf32>
    %163 = arith.addf %161, %162 : vector<16x1xf32>
    %164 = math.rsqrt %163 : vector<16x1xf32>
    %165 = vector.broadcast %164 : vector<16x1xf32> to vector<16x32xf32>
    %166 = arith.mulf %156, %165 : vector<16x32xf32>
    %167 = vector.broadcast %2 : vector<1x32xf32> to vector<16x32xf32>
    %168 = arith.mulf %166, %167 : vector<16x32xf32>
    %169 = vector.broadcast %3 : vector<1x32xf32> to vector<16x32xf32>
    %170 = arith.addf %168, %169 : vector<16x32xf32>
    %cst_71 = arith.constant dense<0.000000e+00> : vector<16xf32>
    %171 = vector.multi_reduction <add>, %170, %cst_71 [1] : vector<16x32xf32> to vector<16xf32>
    %172 = vector.shape_cast %171 : vector<16xf32> to vector<16x1xf32>
    %cst_72 = arith.constant 3.200000e+01 : f32
    %173 = vector.broadcast %cst_72 : f32 to vector<16x1xf32>
    %174 = arith.divf %172, %173 : vector<16x1xf32>
    %175 = vector.broadcast %174 : vector<16x1xf32> to vector<16x32xf32>
    %176 = arith.subf %170, %175 : vector<16x32xf32>
    %177 = arith.mulf %176, %176 : vector<16x32xf32>
    %cst_73 = arith.constant dense<0.000000e+00> : vector<16xf32>
    %178 = vector.multi_reduction <add>, %177, %cst_73 [1] : vector<16x32xf32> to vector<16xf32>
    %179 = vector.shape_cast %178 : vector<16xf32> to vector<16x1xf32>
    %cst_74 = arith.constant 3.200000e+01 : f32
    %180 = vector.broadcast %cst_74 : f32 to vector<16x1xf32>
    %181 = arith.divf %179, %180 : vector<16x1xf32>
    %cst_75 = arith.constant 9.99999974E-6 : f32
    %182 = vector.broadcast %cst_75 : f32 to vector<16x1xf32>
    %183 = arith.addf %181, %182 : vector<16x1xf32>
    %184 = math.rsqrt %183 : vector<16x1xf32>
    %185 = vector.broadcast %184 : vector<16x1xf32> to vector<16x32xf32>
    %186 = arith.mulf %176, %185 : vector<16x32xf32>
    %187 = vector.broadcast %4 : vector<1x32xf32> to vector<16x32xf32>
    %188 = arith.mulf %186, %187 : vector<16x32xf32>
    %189 = vector.broadcast %5 : vector<1x32xf32> to vector<16x32xf32>
    %190 = arith.addf %188, %189 : vector<16x32xf32>
    %191 = arith.truncf %190 : vector<16x32xf32> to vector<16x32xbf16>
    %cst_76 = arith.constant dense<0.000000e+00> : vector<16x128xf32>
    %192 = tpu.matmul %191, %9, %cst_76 {dimension_numbers = #tpu.dot_dimension_numbers<[1], [0], [0], [1], [0, 0, 1, 1], [], []>} : vector<16x32xbf16>, vector<32x128xbf16>, vector<16x128xf32> -> vector<16x128xf32>
    %193 = vector.broadcast %10 : vector<1x128xf32> to vector<16x128xf32>
    %194 = arith.addf %192, %193 : vector<16x128xf32>
    %cst_77 = arith.constant 0.000000e+00 : f32
    %195 = vector.broadcast %cst_77 : f32 to vector<16x128xf32>
    %196 = arith.maximumf %194, %195 : vector<16x128xf32>
    %197 = arith.truncf %196 : vector<16x128xf32> to vector<16x128xbf16>
    %cst_78 = arith.constant dense<0.000000e+00> : vector<16x32xf32>
    %198 = tpu.matmul %197, %11, %cst_78 {dimension_numbers = #tpu.dot_dimension_numbers<[1], [0], [0], [1], [0, 0, 1, 1], [], []>} : vector<16x128xbf16>, vector<128x32xbf16>, vector<16x32xf32> -> vector<16x32xf32>
    %199 = vector.broadcast %12 : vector<1x32xf32> to vector<16x32xf32>
    %200 = arith.addf %198, %199 : vector<16x32xf32>
    %201 = arith.addf %190, %200 : vector<16x32xf32>
    %cst_79 = arith.constant dense<0.000000e+00> : vector<16xf32>
    %202 = vector.multi_reduction <add>, %201, %cst_79 [1] : vector<16x32xf32> to vector<16xf32>
    %203 = vector.shape_cast %202 : vector<16xf32> to vector<16x1xf32>
    %cst_80 = arith.constant 3.200000e+01 : f32
    %204 = vector.broadcast %cst_80 : f32 to vector<16x1xf32>
    %205 = arith.divf %203, %204 : vector<16x1xf32>
    %206 = vector.broadcast %205 : vector<16x1xf32> to vector<16x32xf32>
    %207 = arith.subf %201, %206 : vector<16x32xf32>
    %208 = arith.mulf %207, %207 : vector<16x32xf32>
    %cst_81 = arith.constant dense<0.000000e+00> : vector<16xf32>
    %209 = vector.multi_reduction <add>, %208, %cst_81 [1] : vector<16x32xf32> to vector<16xf32>
    %210 = vector.shape_cast %209 : vector<16xf32> to vector<16x1xf32>
    %cst_82 = arith.constant 3.200000e+01 : f32
    %211 = vector.broadcast %cst_82 : f32 to vector<16x1xf32>
    %212 = arith.divf %210, %211 : vector<16x1xf32>
    %cst_83 = arith.constant 9.99999974E-6 : f32
    %213 = vector.broadcast %cst_83 : f32 to vector<16x1xf32>
    %214 = arith.addf %212, %213 : vector<16x1xf32>
    %215 = math.rsqrt %214 : vector<16x1xf32>
    %216 = vector.broadcast %215 : vector<16x1xf32> to vector<16x32xf32>
    %217 = arith.mulf %207, %216 : vector<16x32xf32>
    %218 = vector.broadcast %0 : vector<1x32xf32> to vector<16x32xf32>
    %219 = arith.mulf %217, %218 : vector<16x32xf32>
    %220 = vector.broadcast %1 : vector<1x32xf32> to vector<16x32xf32>
    %221 = arith.addf %219, %220 : vector<16x32xf32>
    %222 = arith.truncf %221 : vector<16x32xf32> to vector<16x32xbf16>
    %cst_84 = arith.constant dense<0.000000e+00> : vector<16x96xf32>
    %223 = tpu.matmul %222, %6, %cst_84 {dimension_numbers = #tpu.dot_dimension_numbers<[1], [0], [0], [1], [0, 0, 1, 1], [], []>} : vector<16x32xbf16>, vector<32x96xbf16>, vector<16x96xf32> -> vector<16x96xf32>
    %224 = vector.broadcast %7 : vector<1x96xf32> to vector<16x96xf32>
    %225 = arith.addf %223, %224 : vector<16x96xf32>
    %226 = vector.shape_cast %225 : vector<16x96xf32> to vector<2x8x96xf32>
    %cst_85 = arith.constant 0.000000e+00 : f32
    %227 = vector.broadcast %cst_85 : f32 to vector<16x32xf32>
    %228 = vector.extract_strided_slice %226 {offsets = [0, 0, 0], sizes = [2, 8, 8], strides = [1, 1, 1]} : vector<2x8x96xf32> to vector<2x8x8xf32>
    %229 = vector.extract_strided_slice %226 {offsets = [0, 0, 32], sizes = [2, 8, 8], strides = [1, 1, 1]} : vector<2x8x96xf32> to vector<2x8x8xf32>
    %230 = vector.extract_strided_slice %226 {offsets = [0, 0, 64], sizes = [2, 8, 8], strides = [1, 1, 1]} : vector<2x8x96xf32> to vector<2x8x8xf32>
    %231 = arith.truncf %228 : vector<2x8x8xf32> to vector<2x8x8xbf16>
    %232 = arith.truncf %229 : vector<2x8x8xf32> to vector<2x8x8xbf16>
    "tpu.trace_start"() <{level = 10 : i32, message = "bqd,bkd->bqk"}> : () -> ()
    %cst_86 = arith.constant dense<0.000000e+00> : vector<2x8x8xf32>
    %233 = tpu.matmul %231, %232, %cst_86 {dimension_numbers = #tpu.dot_dimension_numbers<[2], [2], [1], [1], [0, 0, 0, 1, 1, 1], [0], [0]>} : vector<2x8x8xbf16>, vector<2x8x8xbf16>, vector<2x8x8xf32> -> vector<2x8x8xf32>
    "tpu.trace_stop"() : () -> ()
    %cst_87 = arith.constant 0.353553385 : f32
    %234 = vector.broadcast %cst_87 : f32 to vector<2x8x8xf32>
    %235 = arith.mulf %233, %234 : vector<2x8x8xf32>
    %cst_88 = arith.constant dense<0xFF800000> : vector<2x8xf32>
    %236 = vector.multi_reduction <maximumf>, %235, %cst_88 [2] : vector<2x8x8xf32> to vector<2x8xf32>
    %237 = vector.shape_cast %236 : vector<2x8xf32> to vector<2x8x1xf32>
    %238 = vector.broadcast %237 : vector<2x8x1xf32> to vector<2x8x8xf32>
    %239 = arith.subf %235, %238 : vector<2x8x8xf32>
    %240 = math.exp %239 : vector<2x8x8xf32>
    %cst_89 = arith.constant dense<0.000000e+00> : vector<2x8xf32>
    %241 = vector.multi_reduction <add>, %240, %cst_89 [2] : vector<2x8x8xf32> to vector<2x8xf32>
    %242 = vector.shape_cast %241 : vector<2x8xf32> to vector<2x8x1xf32>
    %243 = tpu.reciprocal %242 {approx = true} : vector<2x8x1xf32> -> vector<2x8x1xf32>
    %244 = vector.broadcast %243 : vector<2x8x1xf32> to vector<2x8x8xf32>
    %245 = arith.mulf %240, %244 : vector<2x8x8xf32>
    %246 = arith.truncf %245 : vector<2x8x8xf32> to vector<2x8x8xbf16>
    %247 = arith.truncf %230 : vector<2x8x8xf32> to vector<2x8x8xbf16>
    "tpu.trace_start"() <{level = 10 : i32, message = "bqk,bkd->bqd"}> : () -> ()
    %cst_90 = arith.constant dense<0.000000e+00> : vector<2x8x8xf32>
    %248 = tpu.matmul %246, %247, %cst_90 {dimension_numbers = #tpu.dot_dimension_numbers<[2], [1], [1], [2], [0, 0, 0, 1, 1, 2], [0], [0]>} : vector<2x8x8xbf16>, vector<2x8x8xbf16>, vector<2x8x8xf32> -> vector<2x8x8xf32>
    "tpu.trace_stop"() : () -> ()
    %249 = vector.shape_cast %248 : vector<2x8x8xf32> to vector<16x8xf32>
    %250 = arith.truncf %249 : vector<16x8xf32> to vector<16x8xbf16>
    %c0_91 = arith.constant 0 : index
    %c0_92 = arith.constant 0 : index
    %c0_93 = arith.constant 0 : index
    %251 = vector.load %arg10[%c0_91, %c0_92, %c0_93] : memref<4x8x32xbf16, #tpu.memory_space<vmem>>, vector<1x8x32xbf16>
    %252 = vector.shape_cast %251 : vector<1x8x32xbf16> to vector<8x32xbf16>
    %cst_94 = arith.constant dense<0.000000e+00> : vector<16x32xf32>
    %253 = tpu.matmul %250, %252, %cst_94 {dimension_numbers = #tpu.dot_dimension_numbers<[1], [0], [0], [1], [0, 0, 1, 1], [], []>} : vector<16x8xbf16>, vector<8x32xbf16>, vector<16x32xf32> -> vector<16x32xf32>
    %254 = arith.addf %227, %253 : vector<16x32xf32>
    %255 = vector.extract_strided_slice %226 {offsets = [0, 0, 8], sizes = [2, 8, 8], strides = [1, 1, 1]} : vector<2x8x96xf32> to vector<2x8x8xf32>
    %256 = vector.extract_strided_slice %226 {offsets = [0, 0, 40], sizes = [2, 8, 8], strides = [1, 1, 1]} : vector<2x8x96xf32> to vector<2x8x8xf32>
    %257 = vector.extract_strided_slice %226 {offsets = [0, 0, 72], sizes = [2, 8, 8], strides = [1, 1, 1]} : vector<2x8x96xf32> to vector<2x8x8xf32>
    %258 = arith.truncf %255 : vector<2x8x8xf32> to vector<2x8x8xbf16>
    %259 = arith.truncf %256 : vector<2x8x8xf32> to vector<2x8x8xbf16>
    "tpu.trace_start"() <{level = 10 : i32, message = "bqd,bkd->bqk"}> : () -> ()
    %cst_95 = arith.constant dense<0.000000e+00> : vector<2x8x8xf32>
    %260 = tpu.matmul %258, %259, %cst_95 {dimension_numbers = #tpu.dot_dimension_numbers<[2], [2], [1], [1], [0, 0, 0, 1, 1, 1], [0], [0]>} : vector<2x8x8xbf16>, vector<2x8x8xbf16>, vector<2x8x8xf32> -> vector<2x8x8xf32>
    "tpu.trace_stop"() : () -> ()
    %cst_96 = arith.constant 0.353553385 : f32
    %261 = vector.broadcast %cst_96 : f32 to vector<2x8x8xf32>
    %262 = arith.mulf %260, %261 : vector<2x8x8xf32>
    %cst_97 = arith.constant dense<0xFF800000> : vector<2x8xf32>
    %263 = vector.multi_reduction <maximumf>, %262, %cst_97 [2] : vector<2x8x8xf32> to vector<2x8xf32>
    %264 = vector.shape_cast %263 : vector<2x8xf32> to vector<2x8x1xf32>
    %265 = vector.broadcast %264 : vector<2x8x1xf32> to vector<2x8x8xf32>
    %266 = arith.subf %262, %265 : vector<2x8x8xf32>
    %267 = math.exp %266 : vector<2x8x8xf32>
    %cst_98 = arith.constant dense<0.000000e+00> : vector<2x8xf32>
    %268 = vector.multi_reduction <add>, %267, %cst_98 [2] : vector<2x8x8xf32> to vector<2x8xf32>
    %269 = vector.shape_cast %268 : vector<2x8xf32> to vector<2x8x1xf32>
    %270 = tpu.reciprocal %269 {approx = true} : vector<2x8x1xf32> -> vector<2x8x1xf32>
    %271 = vector.broadcast %270 : vector<2x8x1xf32> to vector<2x8x8xf32>
    %272 = arith.mulf %267, %271 : vector<2x8x8xf32>
    %273 = arith.truncf %272 : vector<2x8x8xf32> to vector<2x8x8xbf16>
    %274 = arith.truncf %257 : vector<2x8x8xf32> to vector<2x8x8xbf16>
    "tpu.trace_start"() <{level = 10 : i32, message = "bqk,bkd->bqd"}> : () -> ()
    %cst_99 = arith.constant dense<0.000000e+00> : vector<2x8x8xf32>
    %275 = tpu.matmul %273, %274, %cst_99 {dimension_numbers = #tpu.dot_dimension_numbers<[2], [1], [1], [2], [0, 0, 0, 1, 1, 2], [0], [0]>} : vector<2x8x8xbf16>, vector<2x8x8xbf16>, vector<2x8x8xf32> -> vector<2x8x8xf32>
    "tpu.trace_stop"() : () -> ()
    %276 = vector.shape_cast %275 : vector<2x8x8xf32> to vector<16x8xf32>
    %277 = arith.truncf %276 : vector<16x8xf32> to vector<16x8xbf16>
    %c1_100 = arith.constant 1 : index
    %c0_101 = arith.constant 0 : index
    %c0_102 = arith.constant 0 : index
    %278 = vector.load %arg10[%c1_100, %c0_101, %c0_102] : memref<4x8x32xbf16, #tpu.memory_space<vmem>>, vector<1x8x32xbf16>
    %279 = vector.shape_cast %278 : vector<1x8x32xbf16> to vector<8x32xbf16>
    %cst_103 = arith.constant dense<0.000000e+00> : vector<16x32xf32>
    %280 = tpu.matmul %277, %279, %cst_103 {dimension_numbers = #tpu.dot_dimension_numbers<[1], [0], [0], [1], [0, 0, 1, 1], [], []>} : vector<16x8xbf16>, vector<8x32xbf16>, vector<16x32xf32> -> vector<16x32xf32>
    %281 = arith.addf %254, %280 : vector<16x32xf32>
    %282 = vector.extract_strided_slice %226 {offsets = [0, 0, 16], sizes = [2, 8, 8], strides = [1, 1, 1]} : vector<2x8x96xf32> to vector<2x8x8xf32>
    %283 = vector.extract_strided_slice %226 {offsets = [0, 0, 48], sizes = [2, 8, 8], strides = [1, 1, 1]} : vector<2x8x96xf32> to vector<2x8x8xf32>
    %284 = vector.extract_strided_slice %226 {offsets = [0, 0, 80], sizes = [2, 8, 8], strides = [1, 1, 1]} : vector<2x8x96xf32> to vector<2x8x8xf32>
    %285 = arith.truncf %282 : vector<2x8x8xf32> to vector<2x8x8xbf16>
    %286 = arith.truncf %283 : vector<2x8x8xf32> to vector<2x8x8xbf16>
    "tpu.trace_start"() <{level = 10 : i32, message = "bqd,bkd->bqk"}> : () -> ()
    %cst_104 = arith.constant dense<0.000000e+00> : vector<2x8x8xf32>
    %287 = tpu.matmul %285, %286, %cst_104 {dimension_numbers = #tpu.dot_dimension_numbers<[2], [2], [1], [1], [0, 0, 0, 1, 1, 1], [0], [0]>} : vector<2x8x8xbf16>, vector<2x8x8xbf16>, vector<2x8x8xf32> -> vector<2x8x8xf32>
    "tpu.trace_stop"() : () -> ()
    %cst_105 = arith.constant 0.353553385 : f32
    %288 = vector.broadcast %cst_105 : f32 to vector<2x8x8xf32>
    %289 = arith.mulf %287, %288 : vector<2x8x8xf32>
    %cst_106 = arith.constant dense<0xFF800000> : vector<2x8xf32>
    %290 = vector.multi_reduction <maximumf>, %289, %cst_106 [2] : vector<2x8x8xf32> to vector<2x8xf32>
    %291 = vector.shape_cast %290 : vector<2x8xf32> to vector<2x8x1xf32>
    %292 = vector.broadcast %291 : vector<2x8x1xf32> to vector<2x8x8xf32>
    %293 = arith.subf %289, %292 : vector<2x8x8xf32>
    %294 = math.exp %293 : vector<2x8x8xf32>
    %cst_107 = arith.constant dense<0.000000e+00> : vector<2x8xf32>
    %295 = vector.multi_reduction <add>, %294, %cst_107 [2] : vector<2x8x8xf32> to vector<2x8xf32>
    %296 = vector.shape_cast %295 : vector<2x8xf32> to vector<2x8x1xf32>
    %297 = tpu.reciprocal %296 {approx = true} : vector<2x8x1xf32> -> vector<2x8x1xf32>
    %298 = vector.broadcast %297 : vector<2x8x1xf32> to vector<2x8x8xf32>
    %299 = arith.mulf %294, %298 : vector<2x8x8xf32>
    %300 = arith.truncf %299 : vector<2x8x8xf32> to vector<2x8x8xbf16>
    %301 = arith.truncf %284 : vector<2x8x8xf32> to vector<2x8x8xbf16>
    "tpu.trace_start"() <{level = 10 : i32, message = "bqk,bkd->bqd"}> : () -> ()
    %cst_108 = arith.constant dense<0.000000e+00> : vector<2x8x8xf32>
    %302 = tpu.matmul %300, %301, %cst_108 {dimension_numbers = #tpu.dot_dimension_numbers<[2], [1], [1], [2], [0, 0, 0, 1, 1, 2], [0], [0]>} : vector<2x8x8xbf16>, vector<2x8x8xbf16>, vector<2x8x8xf32> -> vector<2x8x8xf32>
    "tpu.trace_stop"() : () -> ()
    %303 = vector.shape_cast %302 : vector<2x8x8xf32> to vector<16x8xf32>
    %304 = arith.truncf %303 : vector<16x8xf32> to vector<16x8xbf16>
    %c2_109 = arith.constant 2 : index
    %c0_110 = arith.constant 0 : index
    %c0_111 = arith.constant 0 : index
    %305 = vector.load %arg10[%c2_109, %c0_110, %c0_111] : memref<4x8x32xbf16, #tpu.memory_space<vmem>>, vector<1x8x32xbf16>
    %306 = vector.shape_cast %305 : vector<1x8x32xbf16> to vector<8x32xbf16>
    %cst_112 = arith.constant dense<0.000000e+00> : vector<16x32xf32>
    %307 = tpu.matmul %304, %306, %cst_112 {dimension_numbers = #tpu.dot_dimension_numbers<[1], [0], [0], [1], [0, 0, 1, 1], [], []>} : vector<16x8xbf16>, vector<8x32xbf16>, vector<16x32xf32> -> vector<16x32xf32>
    %308 = arith.addf %281, %307 : vector<16x32xf32>
    %309 = vector.extract_strided_slice %226 {offsets = [0, 0, 24], sizes = [2, 8, 8], strides = [1, 1, 1]} : vector<2x8x96xf32> to vector<2x8x8xf32>
    %310 = vector.extract_strided_slice %226 {offsets = [0, 0, 56], sizes = [2, 8, 8], strides = [1, 1, 1]} : vector<2x8x96xf32> to vector<2x8x8xf32>
    %311 = vector.extract_strided_slice %226 {offsets = [0, 0, 88], sizes = [2, 8, 8], strides = [1, 1, 1]} : vector<2x8x96xf32> to vector<2x8x8xf32>
    %312 = arith.truncf %309 : vector<2x8x8xf32> to vector<2x8x8xbf16>
    %313 = arith.truncf %310 : vector<2x8x8xf32> to vector<2x8x8xbf16>
    "tpu.trace_start"() <{level = 10 : i32, message = "bqd,bkd->bqk"}> : () -> ()
    %cst_113 = arith.constant dense<0.000000e+00> : vector<2x8x8xf32>
    %314 = tpu.matmul %312, %313, %cst_113 {dimension_numbers = #tpu.dot_dimension_numbers<[2], [2], [1], [1], [0, 0, 0, 1, 1, 1], [0], [0]>} : vector<2x8x8xbf16>, vector<2x8x8xbf16>, vector<2x8x8xf32> -> vector<2x8x8xf32>
    "tpu.trace_stop"() : () -> ()
    %cst_114 = arith.constant 0.353553385 : f32
    %315 = vector.broadcast %cst_114 : f32 to vector<2x8x8xf32>
    %316 = arith.mulf %314, %315 : vector<2x8x8xf32>
    %cst_115 = arith.constant dense<0xFF800000> : vector<2x8xf32>
    %317 = vector.multi_reduction <maximumf>, %316, %cst_115 [2] : vector<2x8x8xf32> to vector<2x8xf32>
    %318 = vector.shape_cast %317 : vector<2x8xf32> to vector<2x8x1xf32>
    %319 = vector.broadcast %318 : vector<2x8x1xf32> to vector<2x8x8xf32>
    %320 = arith.subf %316, %319 : vector<2x8x8xf32>
    %321 = math.exp %320 : vector<2x8x8xf32>
    %cst_116 = arith.constant dense<0.000000e+00> : vector<2x8xf32>
    %322 = vector.multi_reduction <add>, %321, %cst_116 [2] : vector<2x8x8xf32> to vector<2x8xf32>
    %323 = vector.shape_cast %322 : vector<2x8xf32> to vector<2x8x1xf32>
    %324 = tpu.reciprocal %323 {approx = true} : vector<2x8x1xf32> -> vector<2x8x1xf32>
    %325 = vector.broadcast %324 : vector<2x8x1xf32> to vector<2x8x8xf32>
    %326 = arith.mulf %321, %325 : vector<2x8x8xf32>
    %327 = arith.truncf %326 : vector<2x8x8xf32> to vector<2x8x8xbf16>
    %328 = arith.truncf %311 : vector<2x8x8xf32> to vector<2x8x8xbf16>
    "tpu.trace_start"() <{level = 10 : i32, message = "bqk,bkd->bqd"}> : () -> ()
    %cst_117 = arith.constant dense<0.000000e+00> : vector<2x8x8xf32>
    %329 = tpu.matmul %327, %328, %cst_117 {dimension_numbers = #tpu.dot_dimension_numbers<[2], [1], [1], [2], [0, 0, 0, 1, 1, 2], [0], [0]>} : vector<2x8x8xbf16>, vector<2x8x8xbf16>, vector<2x8x8xf32> -> vector<2x8x8xf32>
    "tpu.trace_stop"() : () -> ()
    %330 = vector.shape_cast %329 : vector<2x8x8xf32> to vector<16x8xf32>
    %331 = arith.truncf %330 : vector<16x8xf32> to vector<16x8xbf16>
    %c3_118 = arith.constant 3 : index
    %c0_119 = arith.constant 0 : index
    %c0_120 = arith.constant 0 : index
    %332 = vector.load %arg10[%c3_118, %c0_119, %c0_120] : memref<4x8x32xbf16, #tpu.memory_space<vmem>>, vector<1x8x32xbf16>
    %333 = vector.shape_cast %332 : vector<1x8x32xbf16> to vector<8x32xbf16>
    %cst_121 = arith.constant dense<0.000000e+00> : vector<16x32xf32>
    %334 = tpu.matmul %331, %333, %cst_121 {dimension_numbers = #tpu.dot_dimension_numbers<[1], [0], [0], [1], [0, 0, 1, 1], [], []>} : vector<16x8xbf16>, vector<8x32xbf16>, vector<16x32xf32> -> vector<16x32xf32>
    %335 = arith.addf %308, %334 : vector<16x32xf32>
    %336 = vector.broadcast %8 : vector<1x32xf32> to vector<16x32xf32>
    %337 = arith.addf %335, %336 : vector<16x32xf32>
    %338 = arith.addf %221, %337 : vector<16x32xf32>
    %cst_122 = arith.constant dense<0.000000e+00> : vector<16xf32>
    %339 = vector.multi_reduction <add>, %338, %cst_122 [1] : vector<16x32xf32> to vector<16xf32>
    %340 = vector.shape_cast %339 : vector<16xf32> to vector<16x1xf32>
    %cst_123 = arith.constant 3.200000e+01 : f32
    %341 = vector.broadcast %cst_123 : f32 to vector<16x1xf32>
    %342 = arith.divf %340, %341 : vector<16x1xf32>
    %343 = vector.broadcast %342 : vector<16x1xf32> to vector<16x32xf32>
    %344 = arith.subf %338, %343 : vector<16x32xf32>
    %345 = arith.mulf %344, %344 : vector<16x32xf32>
    %cst_124 = arith.constant dense<0.000000e+00> : vector<16xf32>
    %346 = vector.multi_reduction <add>, %345, %cst_124 [1] : vector<16x32xf32> to vector<16xf32>
    %347 = vector.shape_cast %346 : vector<16xf32> to vector<16x1xf32>
    %cst_125 = arith.constant 3.200000e+01 : f32
    %348 = vector.broadcast %cst_125 : f32 to vector<16x1xf32>
    %349 = arith.divf %347, %348 : vector<16x1xf32>
    %cst_126 = arith.constant 9.99999974E-6 : f32
    %350 = vector.broadcast %cst_126 : f32 to vector<16x1xf32>
    %351 = arith.addf %349, %350 : vector<16x1xf32>
    %352 = math.rsqrt %351 : vector<16x1xf32>
    %353 = vector.broadcast %352 : vector<16x1xf32> to vector<16x32xf32>
    %354 = arith.mulf %344, %353 : vector<16x32xf32>
    %355 = vector.broadcast %2 : vector<1x32xf32> to vector<16x32xf32>
    %356 = arith.mulf %354, %355 : vector<16x32xf32>
    %357 = vector.broadcast %3 : vector<1x32xf32> to vector<16x32xf32>
    %358 = arith.addf %356, %357 : vector<16x32xf32>
    %cst_127 = arith.constant dense<0.000000e+00> : vector<16xf32>
    %359 = vector.multi_reduction <add>, %358, %cst_127 [1] : vector<16x32xf32> to vector<16xf32>
    %360 = vector.shape_cast %359 : vector<16xf32> to vector<16x1xf32>
    %cst_128 = arith.constant 3.200000e+01 : f32
    %361 = vector.broadcast %cst_128 : f32 to vector<16x1xf32>
    %362 = arith.divf %360, %361 : vector<16x1xf32>
    %363 = vector.broadcast %362 : vector<16x1xf32> to vector<16x32xf32>
    %364 = arith.subf %358, %363 : vector<16x32xf32>
    %365 = arith.mulf %364, %364 : vector<16x32xf32>
    %cst_129 = arith.constant dense<0.000000e+00> : vector<16xf32>
    %366 = vector.multi_reduction <add>, %365, %cst_129 [1] : vector<16x32xf32> to vector<16xf32>
    %367 = vector.shape_cast %366 : vector<16xf32> to vector<16x1xf32>
    %cst_130 = arith.constant 3.200000e+01 : f32
    %368 = vector.broadcast %cst_130 : f32 to vector<16x1xf32>
    %369 = arith.divf %367, %368 : vector<16x1xf32>
    %cst_131 = arith.constant 9.99999974E-6 : f32
    %370 = vector.broadcast %cst_131 : f32 to vector<16x1xf32>
    %371 = arith.addf %369, %370 : vector<16x1xf32>
    %372 = math.rsqrt %371 : vector<16x1xf32>
    %373 = vector.broadcast %372 : vector<16x1xf32> to vector<16x32xf32>
    %374 = arith.mulf %364, %373 : vector<16x32xf32>
    %375 = vector.broadcast %4 : vector<1x32xf32> to vector<16x32xf32>
    %376 = arith.mulf %374, %375 : vector<16x32xf32>
    %377 = vector.broadcast %5 : vector<1x32xf32> to vector<16x32xf32>
    %378 = arith.addf %376, %377 : vector<16x32xf32>
    %379 = arith.truncf %378 : vector<16x32xf32> to vector<16x32xbf16>
    %cst_132 = arith.constant dense<0.000000e+00> : vector<16x128xf32>
    %380 = tpu.matmul %379, %9, %cst_132 {dimension_numbers = #tpu.dot_dimension_numbers<[1], [0], [0], [1], [0, 0, 1, 1], [], []>} : vector<16x32xbf16>, vector<32x128xbf16>, vector<16x128xf32> -> vector<16x128xf32>
    %381 = vector.broadcast %10 : vector<1x128xf32> to vector<16x128xf32>
    %382 = arith.addf %380, %381 : vector<16x128xf32>
    %cst_133 = arith.constant 0.000000e+00 : f32
    %383 = vector.broadcast %cst_133 : f32 to vector<16x128xf32>
    %384 = arith.maximumf %382, %383 : vector<16x128xf32>
    %385 = arith.truncf %384 : vector<16x128xf32> to vector<16x128xbf16>
    %cst_134 = arith.constant dense<0.000000e+00> : vector<16x32xf32>
    %386 = tpu.matmul %385, %11, %cst_134 {dimension_numbers = #tpu.dot_dimension_numbers<[1], [0], [0], [1], [0, 0, 1, 1], [], []>} : vector<16x128xbf16>, vector<128x32xbf16>, vector<16x32xf32> -> vector<16x32xf32>
    %387 = vector.broadcast %12 : vector<1x32xf32> to vector<16x32xf32>
    %388 = arith.addf %386, %387 : vector<16x32xf32>
    %389 = arith.addf %378, %388 : vector<16x32xf32>
    %390 = arith.truncf %389 : vector<16x32xf32> to vector<16x32xbf16>
    %c0_135 = arith.constant 0 : index
    %c0_136 = arith.constant 0 : index
    %391 = vector.load %arg16[%c0_135, %c0_136] : memref<32x128xbf16, #tpu.memory_space<vmem>>, vector<32x128xbf16>
    %cst_137 = arith.constant dense<0.000000e+00> : vector<16x128xf32>
    %392 = tpu.matmul %390, %391, %cst_137 {dimension_numbers = #tpu.dot_dimension_numbers<[1], [0], [0], [1], [0, 0, 1, 1], [], []>} : vector<16x32xbf16>, vector<32x128xbf16>, vector<16x128xf32> -> vector<16x128xf32>
    %c0_138 = arith.constant 0 : index
    %c0_139 = arith.constant 0 : index
    %393 = vector.load %arg17[%c0_138, %c0_139] : memref<1x128xf32, #tpu.memory_space<vmem>>, vector<1x128xf32>
    %394 = vector.broadcast %393 : vector<1x128xf32> to vector<16x128xf32>
    %395 = arith.addf %392, %394 : vector<16x128xf32>
    %c0_140 = arith.constant 0 : index
    %c0_141 = arith.constant 0 : index
    %396 = vector.load %arg18[%c0_140, %c0_141] : memref<16x128xf32, #tpu.memory_space<vmem>>, vector<16x128xf32>
    tpu.vector_store %arg18[%c0_140, %c0_141], %395 {strides = array<i32>} : memref<16x128xf32, #tpu.memory_space<vmem>>, vector<16x128xf32>,
    return
  }
  func.func @transform_0(%arg0: i32) -> (i32, i32) {
    %c0_i32 = arith.constant 0 : i32
    %c0_i32_0 = arith.constant 0 : i32
    %c0_i32_1 = arith.constant 0 : i32
    return %c0_i32, %c0_i32_0 : i32, i32
  }
  func.func @transform_1(%arg0: i32) -> (i32, i32) {
    %c0_i32 = arith.constant 0 : i32
    %c0_i32_0 = arith.constant 0 : i32
    %c0_i32_1 = arith.constant 0 : i32
    return %c0_i32, %c0_i32_0 : i32, i32
  }
  func.func @transform_2(%arg0: i32) -> (i32, i32) {
    %c0_i32 = arith.constant 0 : i32
    %c0_i32_0 = arith.constant 0 : i32
    %c0_i32_1 = arith.constant 0 : i32
    return %c0_i32, %c0_i32_0 : i32, i32
  }
  func.func @transform_3(%arg0: i32) -> (i32, i32) {
    %c0_i32 = arith.constant 0 : i32
    %c0_i32_0 = arith.constant 0 : i32
    %c0_i32_1 = arith.constant 0 : i32
    return %c0_i32, %c0_i32_0 : i32, i32
  }
  func.func @transform_4(%arg0: i32) -> (i32, i32) {
    %c0_i32 = arith.constant 0 : i32
    %c0_i32_0 = arith.constant 0 : i32
    %c0_i32_1 = arith.constant 0 : i32
    return %c0_i32, %c0_i32_0 : i32, i32
  }
  func.func @transform_5(%arg0: i32) -> (i32, i32) {
    %c0_i32 = arith.constant 0 : i32
    %c0_i32_0 = arith.constant 0 : i32
    %c0_i32_1 = arith.constant 0 : i32
    return %c0_i32, %c0_i32_0 : i32, i32
  }
  func.func @transform_6(%arg0: i32) -> (i32, i32) {
    %c0_i32 = arith.constant 0 : i32
    %c0_i32_0 = arith.constant 0 : i32
    %c0_i32_1 = arith.constant 0 : i32
    return %c0_i32, %c0_i32_0 : i32, i32
  }
  func.func @transform_7(%arg0: i32) -> (i32, i32) {
    %c0_i32 = arith.constant 0 : i32
    %c0_i32_0 = arith.constant 0 : i32
    %c0_i32_1 = arith.constant 0 : i32
    return %c0_i32, %c0_i32_0 : i32, i32
  }
  func.func @transform_8(%arg0: i32) -> (i32, i32) {
    %c0_i32 = arith.constant 0 : i32
    %c0_i32_0 = arith.constant 0 : i32
    %c0_i32_1 = arith.constant 0 : i32
    return %c0_i32, %c0_i32_0 : i32, i32
  }
  func.func @transform_9(%arg0: i32) -> (i32, i32, i32) {
    %c0_i32 = arith.constant 0 : i32
    %c0_i32_0 = arith.constant 0 : i32
    %c0_i32_1 = arith.constant 0 : i32
    %c0_i32_2 = arith.constant 0 : i32
    return %c0_i32, %c0_i32_0, %c0_i32_1 : i32, i32, i32
  }
  func.func @transform_10(%arg0: i32) -> (i32, i32) {
    %c0_i32 = arith.constant 0 : i32
    %c0_i32_0 = arith.constant 0 : i32
    %c0_i32_1 = arith.constant 0 : i32
    return %c0_i32, %c0_i32_0 : i32, i32
  }
  func.func @transform_11(%arg0: i32) -> (i32, i32) {
    %c0_i32 = arith.constant 0 : i32
    %c0_i32_0 = arith.constant 0 : i32
    %c0_i32_1 = arith.constant 0 : i32
    return %c0_i32, %c0_i32_0 : i32, i32
  }
  func.func @transform_12(%arg0: i32) -> (i32, i32) {
    %c0_i32 = arith.constant 0 : i32
    %c0_i32_0 = arith.constant 0 : i32
    %c0_i32_1 = arith.constant 0 : i32
    return %c0_i32, %c0_i32_0 : i32, i32
  }
  func.func @transform_13(%arg0: i32) -> (i32, i32) {
    %c0_i32 = arith.constant 0 : i32
    %c0_i32_0 = arith.constant 0 : i32
    %c0_i32_1 = arith.constant 0 : i32
    return %c0_i32, %c0_i32_0 : i32, i32
  }
  func.func @transform_14(%arg0: i32) -> (i32, i32) {
    %c0_i32 = arith.constant 0 : i32
    %c0_i32_0 = arith.constant 0 : i32
    %c0_i32_1 = arith.constant 0 : i32
    return %c0_i32, %c0_i32_0 : i32, i32
  }
  func.func @transform_15(%arg0: i32) -> (i32, i32) {
    %c0_i32 = arith.constant 0 : i32
    %c0_i32_0 = arith.constant 0 : i32
    %c0_i32_1 = arith.constant 0 : i32
    return %c0_i32, %c0_i32_0 : i32, i32
  }
  func.func @transform_16(%arg0: i32) -> (i32, i32) {
    %c0_i32 = arith.constant 0 : i32
    %c0_i32_0 = arith.constant 0 : i32
    %c0_i32_1 = arith.constant 0 : i32
    return %c0_i32, %c0_i32_0 : i32, i32
  }
  func.func @transform_17(%arg0: i32) -> (i32, i32) {
    %c0_i32 = arith.constant 0 : i32
    %c0_i32_0 = arith.constant 0 : i32
    %c0_i32_1 = arith.constant 0 : i32
    return %c0_i32, %c0_i32_0 : i32, i32
  }
}

</mosaic_0001>

<bundles_post_ra>
// kernel: dtransformer_forward.1
= control target key start
LH: loop header
LB: loop body
LE: loop exit
PB: predicated region body
PF: predicated region fallthrough
CT: control target
= control target key end

     0   :  { %s4370_s0 = inlined_call_operand.vmem [shape: f32[16,32], index: 0, kind: input, shape index: {}]   ;;  %s4371_s1 = inlined_call_operand.vmem [shape: f32[1,32], index: 1, kind: input, shape index: {}]   ;;  %s4372_s2 = inlined_call_operand.vmem [shape: f32[1,32], index: 2, kind: input, shape index: {}]   ;;  %s4373_s3 = inlined_call_operand.vmem [shape: f32[1,32], index: 3, kind: input, shape index: {}]   ;;  %s4374_s4 = inlined_call_operand.vmem [shape: f32[1,32], index: 4, kind: input, shape index: {}]   ;;  %s4375_s5 = inlined_call_operand.vmem [shape: f32[1,32], index: 5, kind: input, shape index: {}]   ;;  %s4376_s6 = inlined_call_operand.vmem [shape: f32[1,32], index: 6, kind: input, shape index: {}]   ;;  %s4377_s7 = inlined_call_operand.vmem [shape: bf16[32,96], index: 7, kind: input, shape index: {}]   ;;  %s4378_s8 = inlined_call_operand.vmem [shape: f32[1,96], index: 8, kind: input, shape index: {}]   ;;  %s4379_s9 = inlined_call_operand.vmem [shape: bf16[4,8,32], index: 9, kind: input, shape index: {}]   ;;  %s4380_s10 = inlined_call_operand.vmem [shape: f32[1,32], index: 10, kind: input, shape index: {}]   ;;  %s4381_s11 = inlined_call_operand.vmem [shape: bf16[32,128], index: 11, kind: input, shape index: {}]   ;;  %s4382_s12 = inlined_call_operand.vmem [shape: f32[1,128], index: 12, kind: input, shape index: {}]   ;;  %s4383_s13 = inlined_call_operand.vmem [shape: bf16[128,32], index: 13, kind: input, shape index: {}]   ;;  %s4384_s14 = inlined_call_operand.vmem [shape: f32[1,32], index: 14, kind: input, shape index: {}]   ;;  %s4385_s15 = inlined_call_operand.vmem [shape: bf16[32,128], index: 15, kind: input, shape index: {}]   ;;  %s4386_s16 = inlined_call_operand.vmem [shape: f32[1,128], index: 16, kind: input, shape index: {}]   ;;  %s4387_s17 = inlined_call_operand.hbm [shape: f32[16,128], index: 17, kind: output, shape index: {}]  }
   0x1   :  { %4394 = sst [smem:[#allocation5_spill]] %s4370_s0 }
   0x2   :  { %4395 = sst [smem:[#allocation6_spill]] %s4371_s1 }
   0x3   :  { %s4396_s26 = sld [smem:[#allocation5_spill]]  ;;  %vm94_vm0 = vcmask 261120  }
   0x9   :  { %v92_v0 = vld [vmem:[%s4396_s26] sm:$0xff]  ;;  %v93_v1 = vld [vmem:[%s4396_s26 + $0x8] sm:$0xff] }
   0xa   :  { %v95_v2 = vsel %vm94_vm0, %v92_v0, 0.0  ;;  %v98_v3 = vsel %vm94_vm0, %v93_v1, 0.0 }
   0xb   :  { %96 = vadd.xlane.f32.xlu0 %v95_v2 }
   0xf   :  { %99 = vadd.xlane.f32.xlu0 %v98_v3 }
  0x10   :  { %22 = vsyncpa [#allocation3], 0  ;;  %v3735_v14 = vld [vmem:[%s4377_s7] sm:$0xff]   ;;  %v3616_v15 = vmov 0.0   ;;  %v3743_v16 = vld [vmem:[%s4377_s7 + $0x8] sm:$0xff]   ;;  %vm3617_vm1 = vmmov 0  }
  0x11   :  { %3144 = vmatprep.subr.bf16.mxu1 %v3616_v15  ;;  %3158 = vmatprep.subr.bf16.mxu0 %v3616_v15  ;;  %s4397_s1 = sld [smem:[#allocation6_spill]]  ;;  %v2956_v29 = vld [vmem:[%s4372_s2] ss:$0 sm:$0xff]  ;;  %s3618_s24 = smov 96   ;;  %vm206_vm2 = vcmask 64512   ;;  %vm333_vm3 = vcmask 1043456  }
  0x12   :  { %3145 = vmatpush3.bf16.msra.mxu1 %v3735_v14  ;;  %3148 = vmatprep.mubr.msk.bf16.mxu1 %vm3617_vm1, %v3616_v15  ;;  %v2957_v34 = vld [vmem:[%s4378_s8] ss:$0 sm:$0xff]  ;;  %s3619_s25 = smov 64   ;;  %s3620_s26 = smov 88  }
  0x13   :  { %3146 = vmatprep.subr.bf16.mxu1 %v3616_v15  ;;  %3160 = vmatprep.mubr.msk.bf16.mxu0 %vm3617_vm1, %v3616_v15  ;;  %s3621_s27 = smov 120   ;;  %s3622_s28 = smov 56  }
  0x14   :  { %s3623_s29 = smov 80   ;;  %s3624_s0 = smov 112  }
  0x15   :  { %s3625_s20 = smov 48   ;;  %s3626_s21 = smov 72  }
  0x16   :  { %3147 = vmatpush3.bf16.msra.mxu1 %v3743_v16  ;;  %s4392_s22 = smov 104   ;;  %s4390_s18 = smov 40  }
  0x17   :  { %3152 = vmatprep.subr.bf16.mxu1 %v3616_v15  ;;  %v2955_v25 = vld [vmem:[%s4397_s1] ss:$0 sm:$0xff] }
  0x98   :  { %v97_v4 = vpop.xlane.xlu0 %96 }
  0x99   :  { %v102_v5 = vmul.f32 0.03125, %v97_v4 }
  0x9b   :  { %v104_v6 = vsub.f32 %v92_v0, %v102_v5 }
  0x9c   :  { %v100_v7 = vpop.xlane.xlu0 %99 }
  0x9d   :  { %v103_v8 = vmul.f32 0.03125, %v100_v7  ;;  %v106_v9 = vmul.f32 %v104_v6, %v104_v6 }
  0x9f   :  { %v105_v10 = vsub.f32 %v93_v1, %v103_v8  ;;  %v108_v11 = vsel %vm94_vm0, %v106_v9, 0.0 }
  0xa0   :  { %109 = vadd.xlane.f32.xlu1 %v108_v11 }
  0xa1   :  { %v107_v12 = vmul.f32 %v105_v10, %v105_v10 }
  0xa3   :  { %v111_v13 = vsel %vm94_vm0, %v107_v12, 0.0 }
  0xa4   :  { %112 = vadd.xlane.f32.xlu1 %v111_v13 }
 0x12d   :  { %v110_v17 = vpop.xlane.xlu1 %109 }
 0x12e   :  { %v114_v18 = vmul.f32 0.03125, %v110_v17 }
 0x130   :  { %v116_v19 = vadd.f32 1e-05, %v114_v18 }
 0x131   :  { %v113_v20 = vpop.xlane.xlu1 %112 }
 0x132   :  { %3494 = vrsqrt.f32 %v116_v19  ;;  %v115_v21 = vmul.f32 0.03125, %v113_v20 }
 0x134   :  { %v117_v22 = vadd.f32 1e-05, %v115_v21 }
 0x136   :  { %3496 = vrsqrt.f32 %v117_v22 }
 0x13c   :  { %v3495_v23 = vpop.eup %3494 }
 0x13d   :  { %v120_v24 = vmul.f32 %v3495_v23, %v104_v6 }
 0x13f   :  { %v128_v28 = vmul.f32 %v2955_v25, %v120_v24 }
 0x140   :  { %v3497_v26 = vpop.eup %3496 }
 0x141   :  { %v121_v27 = vmul.f32 %v3497_v26, %v105_v10  ;;  %v3758_v31 = vadd.f32 %v2956_v29, %v128_v28 }
 0x143   :  { %v129_v30 = vmul.f32 %v2955_v25, %v121_v27 }
 0x145   :  { %v3760_v32 = vadd.f32 %v2956_v29, %v129_v30 }
 0x147   :  { %v138_v33 = vpack.c.bf16 %v3760_v32, %v3758_v31 }
 0x149   :  { %3149 = vmatmul.mubr.msk.bf16.vlgmr.msra.gmra.mrb[0].mxu1 %vm94_vm0, %v138_v33 }
 0x14a   :  { %3154 = vmatprep.mubr.msk.bf16.mxu1 %vm3617_vm1, %v3616_v15 }
 0x21c   :  { %v194_v35 = vpop.f32.mrb[0].mxu1 }
 0x21d   :  { %v195_v36 = vadd.f32 %v2957_v34, %v194_v35  ;;  %v3150_v37 = vpop.f32.mrb[1].mxu1 }
 0x21e   :  { %v197_v38 = vpop.f32.mrb[2].mxu1 }
 0x21f   :  { %v3770_v39 = vpack.c.bf16 %v195_v36, %v195_v36  ;;  %v198_v40 = vadd.f32 %v2957_v34, %v197_v38  ;;  %v3151_v41 = vpop.f32.mrb[3].mxu1 }
 0x221   :  { %v3772_v42 = vpack.c.bf16 %v198_v40, %v198_v40  ;;  %204 = vrot.lane.b32.xlu0 %v3770_v39, %s3618_s24 }
 0x223   :  { %254 = vrot.lane.b32.xlu1 %v3772_v42, %s3618_s24 }
 0x293   :  { %v205_v43 = vpop.permute.xlu0 %204 }
 0x294   :  { %v211_v44 = vsel %vm206_vm2, %v205_v43, 0 }
 0x295   :  { %3153 = vmatpush3.bf16.xpose.msra.mxu1 %v211_v44  ;;  %v255_v45 = vpop.permute.xlu1 %254 }
 0x296   :  { %v260_v46 = vsel %vm206_vm2, %v255_v45, 0  ;;  %3164 = vmatprep.subr.bf16.mxu1 %v3616_v15 }
 0x297   :  { %3159 = vmatpush3.bf16.xpose.msra.mxu0 %v260_v46 }
 0x298   :  { %3170 = vmatprep.subr.bf16.mxu0 %v3616_v15 }
 0x29c   :  { %3155 = vmatmul.mubr.msk.bf16.vlgmr.msra.gmra.mrb[4].mxu1 %vm206_vm2, %v3770_v39 }
 0x29d   :  { %3166 = vmatprep.mubr.msk.bf16.mxu1 %vm3617_vm1, %v3616_v15 }
 0x29e   :  { %3161 = vmatmul.mubr.msk.bf16.vlgmr.msra.gmra.mrb[0].mxu0 %vm206_vm2, %v3772_v42 }
 0x29f   :  { %3172 = vmatprep.mubr.msk.bf16.mxu0 %vm3617_vm1, %v3616_v15 }
 0x36f   :  { %v247_v47 = vpop.f32.mrb[4].mxu1 }
 0x370   :  { %v302_v48 = vmul.f32 0.35355338, %v247_v47  ;;  %v3156_v49 = vpop.f32.mrb[5].mxu1 }
 0x371   :  { %v250_v50 = vpop.f32.mrb[6].mxu1  ;;  %v296_v51 = vpop.f32.mrb[0].mxu0 }
 0x372   :  { %v303_v52 = vmul.f32 0.35355338, %v296_v51  ;;  %v3157_v53 = vpop.f32.mrb[7].mxu1  ;;  %v3162_v54 = vpop.f32.mrb[1].mxu0  ;;  %v304_v55 = vsel %vm206_vm2, %v302_v48, -inf }
 0x373   :  { %v299_v56 = vpop.f32.mrb[2].mxu0  ;;  %305 = vmax.xlane.f32.xlu1 %v304_v55 }
 0x374   :  { %v3163_v57 = vpop.f32.mrb[3].mxu0  ;;  %v307_v58 = vsel %vm206_vm2, %v303_v52, -inf }
 0x375   :  { %308 = vmax.xlane.f32.xlu0 %v307_v58 }
 0x384   :  { %377 = vrot.lane.b32.xlu1 %v3772_v42, %s3619_s25 }
 0x388   :  { %429 = vrot.lane.b32.xlu1 %v3770_v39, %s3620_s26 }
 0x400   :  { %v306_v59 = vpop.xlane.xlu1 %305 }
 0x401   :  { %v310_v60 = vsub.f32 %v302_v48, %v306_v59 }
 0x402   :  { %v309_v61 = vpop.xlane.xlu0 %308 }
 0x403   :  { %v312_v62 = vmul.f32 1.442695, %v310_v60  ;;  %v311_v63 = vsub.f32 %v303_v52, %v309_v61 }
 0x404   :  { %v378_v0 = vpop.permute.xlu1 %377 }
 0x405   :  { %3498 = vpow2.f32 %v312_v62  ;;  %v314_v1 = vmul.f32 1.442695, %v311_v63  ;;  %v383_v2 = vsel %vm333_vm3, %v378_v0, 0 }
 0x406   :  { %3171 = vmatpush3.bf16.msra.mxu0 %v383_v2 }
 0x407   :  { %3500 = vpow2.f32 %v314_v1  ;;  %3182 = vmatprep.subr.bf16.mxu0 %v3616_v15 }
 0x408   :  { %v430_v7 = vpop.permute.xlu1 %429 }
 0x409   :  { %v435_v21 = vsel %vm206_vm2, %v430_v7, 0 }
 0x40f   :  { %v3499_v3 = vpop.eup %3498 }
 0x410   :  { %v316_v4 = vsel %vm206_vm2, %v3499_v3, 0.0 }
 0x411   :  { %v3501_v5 = vpop.eup %3500  ;;  %317 = vadd.xlane.f32.xlu0 %v316_v4  ;;  %v2969_v4 = vld [vmem:[%s4379_s9 + $0x4] sm:$0xf] }
 0x412   :  { %v319_v6 = vsel %vm206_vm2, %v3501_v5, 0.0  ;;  %v656_v7 = vsel %vm333_vm3, %v2969_v4, 0 }
 0x413   :  { %320 = vadd.xlane.f32.xlu1 %v319_v6 }
 0x424   :  { %479 = vrot.lane.b32.xlu1 %v3772_v42, %s3620_s26 }
 0x427   :  { %328 = vrot.lane.b32.xlu0 %v3770_v39, %s3619_s25 }
 0x428   :  { %477 = vrot.lane.b32.xlu1 %v3772_v42, %s3621_s27 }
 0x42b   :  { %427 = vrot.lane.b32.xlu0 %v3770_v39, %s3621_s27 }
 0x49e   :  { %v318_v8 = vpop.xlane.xlu0 %317 }
 0x49f   :  { %3502 = vrcp.f32 %v318_v8 }
 0x4a0   :  { %v321_v9 = vpop.xlane.xlu1 %320 }
 0x4a1   :  { %3504 = vrcp.f32 %v321_v9  ;;  %v426_v9 = vld [vmem:[%s4379_s9] sm:$0xf] }
 0x4a2   :  { %v329_v10 = vpop.permute.xlu0 %328 }
 0x4a3   :  { %v335_v11 = vsel %vm333_vm3, %v329_v10, 0 }
 0x4a4   :  { %3165 = vmatpush3.bf16.msra.mxu1 %v335_v11  ;;  %v480_v20 = vpop.permute.xlu1 %479 }
 0x4a5   :  { %3176 = vmatprep.subr.bf16.mxu1 %v3616_v15  ;;  %v485_v23 = vsel %vm206_vm2, %v480_v20, 0 }
 0x4a6   :  { %v428_v24 = vpop.permute.xlu0 %427 }
 0x4a8   :  { %v478_v25 = vpop.permute.xlu1 %477 }
 0x4a9   :  { %v3503_v12 = vpop.eup %3502 }
 0x4aa   :  { %v324_v13 = vmul.f32 %v3503_v12, %v3499_v3  ;;  %v703_v12 = vsel %vm333_vm3, %v426_v9, 0 }
 0x4ab   :  { %v3505_v17 = vpop.eup %3504 }
 0x4ac   :  { %v325_v18 = vmul.f32 %v3505_v17, %v3501_v5  ;;  %v326_v19 = vpack.c.bf16 %v324_v13, %v324_v13 }
 0x4ae   :  { %3167 = vmatmul.mubr.msk.bf16.vlgmr.msra.gmra.mrb[8].mxu1 %vm206_vm2, %v326_v19  ;;  %v327_v22 = vpack.c.bf16 %v325_v18, %v325_v18 }
 0x4af   :  { %3177 = vmatpush3.bf16.xpose.msra.mxu1 %v435_v21  ;;  %3178 = vmatprep.mubr.msk.bf16.mxu1 %vm3617_vm1, %v3616_v15 }
 0x4b0   :  { %3173 = vmatmul.mubr.msk.bf16.vlgmr.msra.gmra.mrb[4].mxu0 %vm206_vm2, %v327_v22  ;;  %3188 = vmatprep.subr.bf16.mxu1 %v3616_v15 }
 0x4b1   :  { %3183 = vmatpush3.bf16.xpose.msra.mxu0 %v485_v23  ;;  %3184 = vmatprep.mubr.msk.bf16.mxu0 %vm3617_vm1, %v3616_v15 }
 0x4b2   :  { %3194 = vmatprep.subr.bf16.mxu0 %v3616_v15 }
 0x4b6   :  { %3179 = vmatmul.mubr.msk.bf16.vlgmr.msra.gmra.mrb[12].mxu1 %vm206_vm2, %v428_v24 }
 0x4b7   :  { %3190 = vmatprep.mubr.msk.bf16.mxu1 %vm3617_vm1, %v3616_v15 }
 0x4b8   :  { %3185 = vmatmul.mubr.msk.bf16.vlgmr.msra.gmra.mrb[8].mxu0 %vm206_vm2, %v478_v25 }
 0x4b9   :  { %3196 = vmatprep.mubr.msk.bf16.mxu0 %vm3617_vm1, %v3616_v15 }
 0x581   :  { %v3826_v26 = vpop.f32.mrb[8].mxu1 }
 0x582   :  { %v3168_v27 = vpop.f32.mrb[9].mxu1 }
 0x583   :  { %v374_v28 = vpop.f32.mrb[10].mxu1  ;;  %v3828_v29 = vpop.f32.mrb[4].mxu0 }
 0x584   :  { %v425_v30 = vpack.c.bf16 %v3828_v29, %v3826_v26  ;;  %v3169_v33 = vpop.f32.mrb[11].mxu1  ;;  %v3174_v34 = vpop.f32.mrb[5].mxu0 }
 0x585   :  { %v422_v35 = vpop.f32.mrb[6].mxu0 }
 0x586   :  { %v3175_v36 = vpop.f32.mrb[7].mxu0 }
 0x589   :  { %v471_v37 = vpop.f32.mrb[12].mxu1 }
 0x58a   :  { %v527_v38 = vmul.f32 0.35355338, %v471_v37  ;;  %v3180_v40 = vpop.f32.mrb[13].mxu1 }
 0x58b   :  { %v474_v41 = vpop.f32.mrb[14].mxu1  ;;  %v521_v43 = vpop.f32.mrb[8].mxu0 }
 0x58c   :  { %v528_v44 = vmul.f32 0.35355338, %v521_v43  ;;  %v3181_v45 = vpop.f32.mrb[15].mxu1  ;;  %v3186_v46 = vpop.f32.mrb[9].mxu0  ;;  %v529_v47 = vsel %vm206_vm2, %v527_v38, -inf }
 0x58d   :  { %v524_v48 = vpop.f32.mrb[10].mxu0  ;;  %530 = vmax.xlane.f32.xlu0 %v529_v47 }
 0x58e   :  { %v3187_v49 = vpop.f32.mrb[11].mxu0  ;;  %v532_v50 = vsel %vm206_vm2, %v528_v44, -inf }
 0x58f   :  { %533 = vmax.xlane.f32.xlu1 %v532_v50 }
 0x5a0   :  { %601 = vrot.lane.b32.xlu1 %v3772_v42, %s3622_s28 }
 0x5a4   :  { %748 = vrot.lane.b32.xlu1 %v3770_v39, %s3623_s29 }
 0x5a8   :  { %798 = vrot.lane.b32.xlu1 %v3772_v42, %s3623_s29 }
 0x5ac   :  { %796 = vrot.lane.b32.xlu1 %v3772_v42, %s3624_s0 }
 0x61a   :  { %v531_v51 = vpop.xlane.xlu0 %530 }
 0x61b   :  { %v535_v52 = vsub.f32 %v527_v38, %v531_v51 }
 0x61c   :  { %v534_v53 = vpop.xlane.xlu1 %533 }
 0x61d   :  { %v537_v54 = vmul.f32 1.442695, %v535_v52  ;;  %v536_v55 = vsub.f32 %v528_v44, %v534_v53 }
 0x61f   :  { %3506 = vpow2.f32 %v537_v54  ;;  %v539_v56 = vmul.f32 1.442695, %v536_v55 }
 0x620   :  { %v602_v57 = vpop.permute.xlu1 %601 }
 0x621   :  { %3508 = vpow2.f32 %v539_v56  ;;  %v607_v58 = vsel %vm333_vm3, %v602_v57, 0 }
 0x622   :  { %3195 = vmatpush3.bf16.msra.mxu0 %v607_v58 }
 0x623   :  { %3206 = vmatprep.subr.bf16.mxu0 %v3616_v15 }
 0x624   :  { %v749_v13 = vpop.permute.xlu1 %748 }
 0x625   :  { %v754_v28 = vsel %vm206_vm2, %v749_v13, 0 }
 0x628   :  { %v799_v17 = vpop.permute.xlu1 %798 }
 0x629   :  { %v3507_v59 = vpop.eup %3506  ;;  %v804_v18 = vsel %vm206_vm2, %v799_v17, 0 }
 0x62a   :  { %v541_v60 = vsel %vm206_vm2, %v3507_v59, 0.0 }
 0x62b   :  { %v3509_v61 = vpop.eup %3508  ;;  %542 = vadd.xlane.f32.xlu0 %v541_v60 }
 0x62c   :  { %v544_v62 = vsel %vm206_vm2, %v3509_v61, 0.0  ;;  %v797_v19 = vpop.permute.xlu1 %796 }
 0x62f   :  { %545 = vadd.xlane.f32.xlu0 %v544_v62 }
 0x645   :  { %553 = vrot.lane.b32.xlu0 %v3770_v39, %s3622_s28 }
 0x649   :  { %746 = vrot.lane.b32.xlu0 %v3770_v39, %s3624_s0 }
 0x6b8   :  { %v543_v63 = vpop.xlane.xlu0 %542 }
 0x6b9   :  { %3510 = vrcp.f32 %v543_v63 }
 0x6bc   :  { %v546_v0 = vpop.xlane.xlu0 %545 }
 0x6bd   :  { %3512 = vrcp.f32 %v546_v0 }
 0x6c0   :  { %v554_v1 = vpop.permute.xlu0 %553 }
 0x6c1   :  { %v559_v2 = vsel %vm333_vm3, %v554_v1, 0 }
 0x6c2   :  { %3189 = vmatpush3.bf16.msra.mxu1 %v559_v2 }
 0x6c3   :  { %v3511_v3 = vpop.eup %3510  ;;  %3200 = vmatprep.subr.bf16.mxu1 %v3616_v15 }
 0x6c4   :  { %v549_v5 = vmul.f32 %v3511_v3, %v3507_v59  ;;  %v747_v34 = vpop.permute.xlu0 %746 }
 0x6c6   :  { %v551_v6 = vpack.c.bf16 %v549_v5, %v549_v5 }
 0x6c7   :  { %v3513_v8 = vpop.eup %3512 }
 0x6c8   :  { %v550_v10 = vmul.f32 %v3513_v8, %v3509_v61  ;;  %3191 = vmatmul.mubr.msk.bf16.vlgmr.msra.gmra.mrb[16].mxu1 %vm206_vm2, %v551_v6 }
 0x6c9   :  { %3201 = vmatpush3.bf16.msra.mxu1 %v656_v7  ;;  %3202 = vmatprep.mubr.msk.bf16.mxu1 %vm3617_vm1, %v3616_v15 }
 0x6ca   :  { %v552_v11 = vpack.c.bf16 %v550_v10, %v550_v10  ;;  %3212 = vmatprep.subr.bf16.mxu1 %v3616_v15 }
 0x6cc   :  { %3197 = vmatmul.mubr.msk.bf16.vlgmr.msra.gmra.mrb[12].mxu0 %vm206_vm2, %v552_v11 }
 0x6cd   :  { %3207 = vmatpush3.bf16.msra.mxu0 %v703_v12  ;;  %3208 = vmatprep.mubr.msk.bf16.mxu0 %vm3617_vm1, %v3616_v15 }
 0x6ce   :  { %3218 = vmatprep.subr.bf16.mxu0 %v3616_v15 }
 0x6d4   :  { %3209 = vmatmul.mubr.msk.bf16.vlgmr.msra.gmra.mrb[16].mxu0 %vm206_vm2, %v425_v30 }
 0x6d5   :  { %3220 = vmatprep.mubr.msk.bf16.mxu0 %vm3617_vm1, %v3616_v15 }
 0x6d6   :  { %3219 = vmatpush3.bf16.xpose.msra.mxu0 %v804_v18 }
 0x6d7   :  { %3230 = vmatprep.subr.bf16.mxu0 %v3616_v15 }
 0x6dd   :  { %3221 = vmatmul.mubr.msk.bf16.vlgmr.msra.gmra.mrb[20].mxu0 %vm206_vm2, %v797_v19 }
 0x6de   :  { %3232 = vmatprep.mubr.msk.bf16.mxu0 %vm3617_vm1, %v3616_v15 }
 0x79b   :  { %v595_v20 = vpop.f32.mrb[16].mxu1 }
 0x79c   :  { %v3192_v21 = vpop.f32.mrb[17].mxu1 }
 0x79d   :  { %v598_v22 = vpop.f32.mrb[18].mxu1 }
 0x79e   :  { %v3193_v23 = vpop.f32.mrb[19].mxu1 }
 0x79f   :  { %v643_v24 = vpop.f32.mrb[12].mxu0 }
 0x7a0   :  { %v649_v25 = vpack.c.bf16 %v643_v24, %v595_v20  ;;  %v3198_v26 = vpop.f32.mrb[13].mxu0 }
 0x7a1   :  { %v646_v27 = vpop.f32.mrb[14].mxu0 }
 0x7a2   :  { %v3199_v29 = vpop.f32.mrb[15].mxu0  ;;  %3203 = vmatmul.mubr.msk.bf16.vlgmr.msra.gmra.mrb[20].mxu1 %vm206_vm2, %v649_v25  ;;  %v2976_v25 = vld [vmem:[%s4379_s9 + $0x8] sm:$0xf] }
 0x7a3   :  { %3213 = vmatpush3.bf16.xpose.msra.mxu1 %v754_v28  ;;  %3214 = vmatprep.mubr.msk.bf16.mxu1 %vm3617_vm1, %v3616_v15  ;;  %v975_v26 = vsel %vm333_vm3, %v2976_v25, 0 }
 0x7a4   :  { %3224 = vmatprep.subr.bf16.mxu1 %v3616_v15 }
 0x7a7   :  { %v739_v30 = vpop.f32.mrb[16].mxu0 }
 0x7a8   :  { %v3210_v33 = vpop.f32.mrb[17].mxu0 }
 0x7a9   :  { %v742_v35 = vpop.f32.mrb[18].mxu0 }
 0x7aa   :  { %v3211_v36 = vpop.f32.mrb[19].mxu0  ;;  %3215 = vmatmul.mubr.msk.bf16.vlgmr.msra.gmra.mrb[24].mxu1 %vm206_vm2, %v747_v34 }
 0x7ab   :  { %3226 = vmatprep.mubr.msk.bf16.mxu1 %vm3617_vm1, %v3616_v15 }
 0x7b0   :  { %v840_v37 = vpop.f32.mrb[20].mxu0 }
 0x7b1   :  { %v847_v38 = vmul.f32 0.35355338, %v840_v37  ;;  %v3222_v40 = vpop.f32.mrb[21].mxu0 }
 0x7b2   :  { %v843_v41 = vpop.f32.mrb[22].mxu0 }
 0x7b3   :  { %v3223_v43 = vpop.f32.mrb[23].mxu0  ;;  %v851_v44 = vsel %vm206_vm2, %v847_v38, -inf }
 0x7b4   :  { %852 = vmax.xlane.f32.xlu1 %v851_v44 }
 0x7c5   :  { %920 = vrot.lane.b32.xlu1 %v3772_v42, %s3625_s20 }
 0x7c9   :  { %1022 = vrot.lane.b32.xlu1 %v3770_v39, %s3626_s21 }
 0x7cd   :  { %1072 = vrot.lane.b32.xlu1 %v3772_v42, %s3626_s21 }
 0x7d1   :  { %1070 = vrot.lane.b32.xlu1 %v3772_v42, %s4392_s22 }
 0x841   :  { %v853_v45 = vpop.xlane.xlu1 %852 }
 0x842   :  { %v855_v48 = vsub.f32 %v847_v38, %v853_v45 }
 0x844   :  { %v858_v49 = vmul.f32 1.442695, %v855_v48 }
 0x845   :  { %v921_v46 = vpop.permute.xlu1 %920 }
 0x846   :  { %v926_v47 = vsel %vm333_vm3, %v921_v46, 0  ;;  %3514 = vpow2.f32 %v858_v49 }
 0x847   :  { %3231 = vmatpush3.bf16.msra.mxu0 %v926_v47 }
 0x848   :  { %3242 = vmatprep.subr.bf16.mxu0 %v3616_v15 }
 0x849   :  { %v1023_v8 = vpop.permute.xlu1 %1022 }
 0x84a   :  { %v1028_v10 = vsel %vm206_vm2, %v1023_v8, 0 }
 0x850   :  { %v3515_v62 = vpop.eup %3514 }
 0x851   :  { %v863_v63 = vsel %vm206_vm2, %v3515_v62, 0.0 }
 0x875   :  { %v692_v50 = vpop.f32.mrb[20].mxu1 }
 0x876   :  { %v3898_v51 = vadd.f32 %v739_v30, %v692_v50  ;;  %v3204_v52 = vpop.f32.mrb[21].mxu1 }
 0x877   :  { %v695_v53 = vpop.f32.mrb[22].mxu1 }
 0x878   :  { %v3900_v54 = vadd.f32 %v742_v35, %v695_v53  ;;  %v3205_v55 = vpop.f32.mrb[23].mxu1  ;;  %v1073_v35 = vpop.permute.xlu1 %1072 }
 0x879   :  { %v1078_v41 = vsel %vm206_vm2, %v1073_v35, 0 }
 0x87c   :  { %v1071_v44 = vpop.permute.xlu1 %1070 }
 0x87d   :  { %v790_v56 = vpop.f32.mrb[24].mxu1 }
 0x87e   :  { %v846_v57 = vmul.f32 0.35355338, %v790_v56  ;;  %v3216_v58 = vpop.f32.mrb[25].mxu1 }
 0x87f   :  { %v793_v59 = vpop.f32.mrb[26].mxu1 }
 0x880   :  { %v3217_v60 = vpop.f32.mrb[27].mxu1  ;;  %v848_v61 = vsel %vm206_vm2, %v846_v57, -inf }
 0x881   :  { %849 = vmax.xlane.f32.xlu0 %v848_v61 }
 0x885   :  { %864 = vadd.xlane.f32.xlu0 %v863_v63 }
 0x90e   :  { %v850_v0 = vpop.xlane.xlu0 %849 }
 0x90f   :  { %v854_v1 = vsub.f32 %v846_v57, %v850_v0 }
 0x911   :  { %v856_v2 = vmul.f32 1.442695, %v854_v1 }
 0x912   :  { %v865_v3 = vpop.xlane.xlu0 %864 }
 0x913   :  { %3516 = vpow2.f32 %v856_v2 }
 0x914   :  { %3518 = vrcp.f32 %v865_v3 }
 0x91d   :  { %v3517_v4 = vpop.eup %3516 }
 0x91e   :  { %v3519_v5 = vpop.eup %3518  ;;  %v860_v6 = vsel %vm206_vm2, %v3517_v4, 0.0 }
 0x91f   :  { %v869_v7 = vmul.f32 %v3519_v5, %v3515_v62  ;;  %861 = vadd.xlane.f32.xlu0 %v860_v6 }
 0x921   :  { %v871_v9 = vpack.c.bf16 %v869_v7, %v869_v7 }
 0x923   :  { %3233 = vmatmul.mubr.msk.bf16.vlgmr.msra.gmra.mrb[24].mxu0 %vm206_vm2, %v871_v9 }
 0x924   :  { %3243 = vmatpush3.bf16.xpose.msra.mxu0 %v1028_v10  ;;  %3244 = vmatprep.mubr.msk.bf16.mxu0 %vm3617_vm1, %v3616_v15 }
 0x925   :  { %3254 = vmatprep.subr.bf16.mxu0 %v3616_v15 }
 0x935   :  { %872 = vrot.lane.b32.xlu0 %v3770_v39, %s3625_s20 }
 0x939   :  { %1020 = vrot.lane.b32.xlu0 %v3770_v39, %s4392_s22 }
 0x9ac   :  { %v862_v11 = vpop.xlane.xlu0 %861 }
 0x9ad   :  { %3520 = vrcp.f32 %v862_v11 }
 0x9b0   :  { %v873_v12 = vpop.permute.xlu0 %872 }
 0x9b1   :  { %v878_v13 = vsel %vm333_vm3, %v873_v12, 0 }
 0x9b2   :  { %3225 = vmatpush3.bf16.msra.mxu1 %v878_v13  ;;  %v2982_v13 = vld [vmem:[%s4379_s9 + $0xc] sm:$0xf] }
 0x9b3   :  { %3236 = vmatprep.subr.bf16.mxu1 %v3616_v15 }
 0x9b4   :  { %v1021_v17 = vpop.permute.xlu0 %1020 }
 0x9b5   :  { %3245 = vmatmul.mubr.msk.bf16.vlgmr.msra.gmra.mrb[28].mxu0 %vm206_vm2, %v1021_v17  ;;  %v1249_v17 = vsel %vm333_vm3, %v2982_v13, 0 }
 0x9b6   :  { %3256 = vmatprep.mubr.msk.bf16.mxu0 %vm3617_vm1, %v3616_v15 }
 0x9b7   :  { %v3521_v18 = vpop.eup %3520 }
 0x9b8   :  { %v868_v19 = vmul.f32 %v3521_v18, %v3517_v4 }
 0x9ba   :  { %v870_v20 = vpack.c.bf16 %v868_v19, %v868_v19 }
 0x9bc   :  { %3227 = vmatmul.mubr.msk.bf16.vlgmr.msra.gmra.mrb[28].mxu1 %vm206_vm2, %v870_v20 }
 0x9bd   :  { %3238 = vmatprep.mubr.msk.bf16.mxu1 %vm3617_vm1, %v3616_v15  ;;  %3237 = vmatpush3.bf16.msra.mxu1 %v975_v26 }
 0x9be   :  { %3248 = vmatprep.subr.bf16.mxu1 %v3616_v15 }
 0x9f6   :  { %v962_v21 = vpop.f32.mrb[24].mxu0 }
 0x9f7   :  { %v3234_v22 = vpop.f32.mrb[25].mxu0 }
 0x9f8   :  { %v965_v23 = vpop.f32.mrb[26].mxu0 }
 0x9f9   :  { %v3235_v24 = vpop.f32.mrb[27].mxu0 }
 0xa88   :  { %v1064_v27 = vpop.f32.mrb[28].mxu0 }
 0xa89   :  { %v1120_v28 = vmul.f32 0.35355338, %v1064_v27  ;;  %v3246_v29 = vpop.f32.mrb[29].mxu0  ;;  %v2984_v27 = vld [vmem:[%s4380_s10] ss:$0 sm:$0xff] }
 0xa8a   :  { %v1067_v30 = vpop.f32.mrb[30].mxu0 }
 0xa8b   :  { %v3247_v33 = vpop.f32.mrb[31].mxu0  ;;  %v1122_v34 = vsel %vm206_vm2, %v1120_v28, -inf }
 0xa8c   :  { %1123 = vmax.xlane.f32.xlu0 %v1122_v34 }
 0xa8f   :  { %v914_v36 = vpop.f32.mrb[28].mxu1 }
 0xa90   :  { %v968_v37 = vpack.c.bf16 %v962_v21, %v914_v36  ;;  %v3228_v38 = vpop.f32.mrb[29].mxu1 }
 0xa91   :  { %v917_v40 = vpop.f32.mrb[30].mxu1 }
 0xa92   :  { %v3229_v43 = vpop.f32.mrb[31].mxu1  ;;  %3239 = vmatmul.mubr.msk.bf16.vlgmr.msra.gmra.mrb[32].mxu1 %vm206_vm2, %v968_v37 }
 0xa93   :  { %3249 = vmatpush3.bf16.xpose.msra.mxu1 %v1078_v41  ;;  %3250 = vmatprep.mubr.msk.bf16.mxu1 %vm3617_vm1, %v3616_v15 }
 0xa94   :  { %3260 = vmatprep.subr.bf16.mxu1 %v3616_v15 }
 0xa9a   :  { %3251 = vmatmul.mubr.msk.bf16.vlgmr.msra.gmra.mrb[36].mxu1 %vm206_vm2, %v1071_v44 }
 0xa9b   :  { %3262 = vmatprep.mubr.msk.bf16.mxu1 %vm3617_vm1, %v3616_v15 }
 0xb19   :  { %v1124_v45 = vpop.xlane.xlu0 %1123 }
 0xb1a   :  { %v1128_v46 = vsub.f32 %v1120_v28, %v1124_v45 }
 0xb1c   :  { %v1130_v47 = vmul.f32 1.442695, %v1128_v46 }
 0xb1e   :  { %3522 = vpow2.f32 %v1130_v47 }
 0xb28   :  { %v3523_v48 = vpop.eup %3522 }
 0xb29   :  { %v1134_v49 = vsel %vm206_vm2, %v3523_v48, 0.0 }
 0xb2a   :  { %1135 = vadd.xlane.f32.xlu0 %v1134_v49 }
 0xb65   :  { %v1011_v50 = vpop.f32.mrb[32].mxu1 }
 0xb66   :  { %v1018_v52 = vadd.f32 %v1011_v50, %v3898_v51  ;;  %v3240_v53 = vpop.f32.mrb[33].mxu1 }
 0xb67   :  { %v1014_v55 = vpop.f32.mrb[34].mxu1 }
 0xb68   :  { %v1019_v56 = vadd.f32 %v1014_v55, %v3900_v54  ;;  %v3241_v57 = vpop.f32.mrb[35].mxu1 }
 0xb6d   :  { %v1114_v58 = vpop.f32.mrb[36].mxu1 }
 0xb6e   :  { %v1121_v59 = vmul.f32 0.35355338, %v1114_v58  ;;  %v3252_v60 = vpop.f32.mrb[37].mxu1 }
 0xb6f   :  { %v1117_v61 = vpop.f32.mrb[38].mxu1 }
 0xb70   :  { %v3253_v62 = vpop.f32.mrb[39].mxu1  ;;  %v1125_v63 = vsel %vm206_vm2, %v1121_v59, -inf  ;;  %v2985_v61 = vld [vmem:[%s4373_s3] ss:$0 sm:$0xff] }
 0xb71   :  { %1126 = vmax.xlane.f32.xlu1 %v1125_v63 }
 0xb82   :  { %1194 = vrot.lane.b32.xlu1 %v3772_v42, %s4390_s18 }
 0xbb7   :  { %v1136_v5 = vpop.xlane.xlu0 %1135 }
 0xbfe   :  { %v1127_v0 = vpop.xlane.xlu1 %1126 }
 0xbff   :  { %v1129_v1 = vsub.f32 %v1121_v59, %v1127_v0  ;;  %v2986_v0 = vld [vmem:[%s4374_s4] ss:$0 sm:$0xff] }
 0xc01   :  { %v1132_v51 = vmul.f32 1.442695, %v1129_v1 }
 0xc02   :  { %v1195_v2 = vpop.permute.xlu1 %1194 }
 0xc03   :  { %3524 = vpow2.f32 %v1132_v51  ;;  %v1200_v54 = vsel %vm333_vm3, %v1195_v2, 0 }
 0xc04   :  { %3261 = vmatpush3.bf16.msra.mxu1 %v1200_v54  ;;  %3526 = vrcp.f32 %v1136_v5 }
 0xc05   :  { %3272 = vmatprep.subr.bf16.mxu1 %v3616_v15 }
 0xc0d   :  { %v3525_v3 = vpop.eup %3524 }
 0xc0e   :  { %v1137_v4 = vsel %vm206_vm2, %v3525_v3, 0.0  ;;  %v3527_v42 = vpop.eup %3526 }
 0xc0f   :  { %1138 = vadd.xlane.f32.xlu0 %v1137_v4  ;;  %v1142_v7 = vmul.f32 %v3527_v42, %v3523_v48 }
 0xc11   :  { %v1144_v10 = vpack.c.bf16 %v1142_v7, %v1142_v7 }
 0xc25   :  { %1146 = vrot.lane.b32.xlu0 %v3770_v39, %s4390_s18 }
 0xc9c   :  { %v1139_v6 = vpop.xlane.xlu0 %1138 }
 0xc9d   :  { %3528 = vrcp.f32 %v1139_v6 }
 0xca0   :  { %v1147_v8 = vpop.permute.xlu0 %1146 }
 0xca1   :  { %v1152_v9 = vsel %vm333_vm3, %v1147_v8, 0 }
 0xca2   :  { %3255 = vmatpush3.bf16.msra.mxu0 %v1152_v9 }
 0xca3   :  { %3266 = vmatprep.subr.bf16.mxu0 %v3616_v15 }
 0xca5   :  { %3257 = vmatmul.mubr.msk.bf16.vlgmr.msra.gmra.mrb[32].mxu0 %vm206_vm2, %v1144_v10 }
 0xca6   :  { %3268 = vmatprep.mubr.msk.bf16.mxu0 %vm3617_vm1, %v3616_v15  ;;  %3267 = vmatpush3.bf16.msra.mxu0 %v1249_v17  ;;  %v3985_v17 = vld [vmem:[%s4381_s11] sm:$0xff]  }
 0xca7   :  { %v3529_v11 = vpop.eup %3528  ;;  %3280 = vmatprep.subr.bf16.mxu0 %v3616_v15 }
 0xca8   :  { %v1143_v39 = vmul.f32 %v3529_v11, %v3525_v3 }
 0xcaa   :  { %v1145_v12 = vpack.c.bf16 %v1143_v39, %v1143_v39 }
 0xcac   :  { %3263 = vmatmul.mubr.msk.bf16.vlgmr.msra.gmra.mrb[40].mxu1 %vm206_vm2, %v1145_v12 }
 0xcad   :  { %3276 = vmatprep.mubr.msk.bf16.mxu1 %vm3617_vm1, %v3616_v15  ;;  %3273 = vmatpush3.bf16.msra.mxu1 %v3985_v17 }
 0xcae   :  { %3274 = vmatprep.subr.bf16.mxu1 %v3616_v15 }
 0xd78   :  { %v1188_v18 = vpop.f32.mrb[32].mxu0 }
 0xd79   :  { %v3258_v19 = vpop.f32.mrb[33].mxu0 }
 0xd7a   :  { %v1191_v20 = vpop.f32.mrb[34].mxu0  ;;  %v3998_v19 = vld [vmem:[%s4383_s13] sm:$0xff]  }
 0xd7b   :  { %v3259_v21 = vpop.f32.mrb[35].mxu0  ;;  %v4005_v20 = vld [vmem:[%s4383_s13 + $0x8] sm:$0xff]  }
 0xd7c   :  { %v4012_v21 = vld [vmem:[%s4383_s13 + $0x10] sm:$0xff]  }
 0xd7f   :  { %v1236_v22 = vpop.f32.mrb[40].mxu1 }
 0xd80   :  { %v1242_v23 = vpack.c.bf16 %v1236_v22, %v1188_v18  ;;  %v3264_v24 = vpop.f32.mrb[41].mxu1  ;;  %v3991_v18 = vld [vmem:[%s4381_s11 + $0x8] sm:$0xff]   ;;  %v4019_v22 = vld [vmem:[%s4383_s13 + $0x18] sm:$0xff]  }
 0xd81   :  { %v1239_v25 = vpop.f32.mrb[42].mxu1  ;;  %3275 = vmatpush3.bf16.msra.mxu1 %v3991_v18  ;;  %v4033_v24 = vld [vmem:[%s4383_s13 + $0x28] sm:$0xff]  }
 0xd82   :  { %v3265_v26 = vpop.f32.mrb[43].mxu1  ;;  %3269 = vmatmul.mubr.msk.bf16.vlgmr.msra.gmra.mrb[36].mxu0 %vm206_vm2, %v1242_v23  ;;  %3300 = vmatprep.subr.bf16.mxu1 %v3616_v15  ;;  %v4026_v23 = vld [vmem:[%s4383_s13 + $0x20] sm:$0xff]  }
 0xd83   :  { %3296 = vmatprep.mubr.msk.bf16.mxu0 %vm3617_vm1, %v3616_v15  ;;  %3281 = vmatpush3.bf16.msra.mxu0 %v3998_v19 }
 0xd84   :  { %3282 = vmatprep.subr.bf16.mxu0 %v3616_v15 }
 0xd87   :  { %3283 = vmatpush3.bf16.msra.mxu0 %v4005_v20 }
 0xd88   :  { %3284 = vmatprep.subr.bf16.mxu0 %v3616_v15 }
 0xd8b   :  { %3285 = vmatpush3.bf16.msra.mxu0 %v4012_v21 }
 0xd8c   :  { %3286 = vmatprep.subr.bf16.mxu0 %v3616_v15 }
 0xd8f   :  { %3287 = vmatpush3.bf16.msra.mxu0 %v4019_v22 }
 0xd90   :  { %3288 = vmatprep.subr.bf16.mxu0 %v3616_v15 }
 0xd93   :  { %3289 = vmatpush3.bf16.msra.mxu0 %v4026_v23 }
 0xd94   :  { %3290 = vmatprep.subr.bf16.mxu0 %v3616_v15 }
 0xd97   :  { %3291 = vmatpush3.bf16.msra.mxu0 %v4033_v24 }
 0xd98   :  { %3292 = vmatprep.subr.bf16.mxu0 %v3616_v15 }
 0xe55   :  { %v1285_v28 = vpop.f32.mrb[36].mxu0 }
 0xe56   :  { %v1292_v29 = vadd.f32 %v1285_v28, %v1018_v52  ;;  %v3270_v30 = vpop.f32.mrb[37].mxu0 }
 0xe57   :  { %v1288_v33 = vpop.f32.mrb[38].mxu0 }
 0xe58   :  { %v1300_v34 = vadd.f32 %v2984_v27, %v1292_v29  ;;  %v1293_v35 = vadd.f32 %v1288_v33, %v1019_v56  ;;  %v3271_v36 = vpop.f32.mrb[39].mxu0 }
 0xe5a   :  { %v1301_v37 = vadd.f32 %v2984_v27, %v1293_v35  ;;  %v1302_v38 = vadd.f32 %v1300_v34, %v3758_v31  ;;  %v2987_v34 = vld [vmem:[%s4375_s5] ss:$0 sm:$0xff] }
 0xe5c   :  { %v1304_v40 = vsel %vm94_vm0, %v1302_v38, 0.0  ;;  %v1303_v41 = vadd.f32 %v1301_v37, %v3760_v32 }
 0xe5d   :  { %1305 = vadd.xlane.f32.xlu1 %v1304_v40  ;;  %v2988_v40 = vld [vmem:[%s4376_s6] ss:$0 sm:$0xff] }
 0xe5e   :  { %v1307_v43 = vsel %vm94_vm0, %v1303_v41, 0.0 }
 0xe5f   :  { %1308 = vadd.xlane.f32.xlu0 %v1307_v43 }
 0xeea   :  { %v1306_v44 = vpop.xlane.xlu1 %1305 }
 0xeeb   :  { %v1310_v45 = vmul.f32 0.03125, %v1306_v44 }
 0xeec   :  { %v1309_v46 = vpop.xlane.xlu0 %1308 }
 0xeed   :  { %v1312_v47 = vsub.f32 %v1302_v38, %v1310_v45  ;;  %v1311_v48 = vmul.f32 0.03125, %v1309_v46  ;;  %v4054_v46 = vld [vmem:[%s4383_s13 + $0x30] sm:$0xff]  }
 0xeee   :  { %3293 = vmatpush3.bf16.msra.mxu0 %v4054_v46 }
 0xeef   :  { %v1313_v49 = vsub.f32 %v1303_v41, %v1311_v48  ;;  %v1314_v50 = vmul.f32 %v1312_v47, %v1312_v47  ;;  %3294 = vmatprep.subr.bf16.mxu0 %v3616_v15 }
 0xef1   :  { %v1316_v52 = vsel %vm94_vm0, %v1314_v50, 0.0  ;;  %v1315_v53 = vmul.f32 %v1313_v49, %v1313_v49 }
 0xef2   :  { %1317 = vadd.xlane.f32.xlu0 %v1316_v52 }
 0xef3   :  { %v1319_v31 = vsel %vm94_vm0, %v1315_v53, 0.0 }
 0xef4   :  { %1320 = vadd.xlane.f32.xlu1 %v1319_v31 }
 0xf7f   :  { %v1318_v55 = vpop.xlane.xlu0 %1317 }
 0xf80   :  { %v1322_v32 = vmul.f32 0.03125, %v1318_v55 }
 0xf81   :  { %v1321_v56 = vpop.xlane.xlu1 %1320 }
 0xf82   :  { %v1324_v57 = vadd.f32 1e-05, %v1322_v32  ;;  %v1323_v58 = vmul.f32 0.03125, %v1321_v56  ;;  %v2993_v56 = vld [vmem:[%s4384_s14] ss:$0 sm:$0xff] }
 0xf84   :  { %3530 = vrsqrt.f32 %v1324_v57  ;;  %v1325_v59 = vadd.f32 1e-05, %v1323_v58 }
 0xf86   :  { %3532 = vrsqrt.f32 %v1325_v59 }
 0xf8e   :  { %v3531_v60 = vpop.eup %3530 }
 0xf8f   :  { %v1328_v62 = vmul.f32 %v3531_v60, %v1312_v47 }
 0xf90   :  { %v3533_v63 = vpop.eup %3532 }
 0xf91   :  { %v1336_v1 = vmul.f32 %v2985_v61, %v1328_v62  ;;  %v1329_v51 = vmul.f32 %v3533_v63, %v1313_v49 }
 0xf93   :  { %v1344_v2 = vadd.f32 %v2986_v0, %v1336_v1  ;;  %v1337_v54 = vmul.f32 %v2985_v61, %v1329_v51 }
 0xf95   :  { %v1346_v3 = vsel %vm94_vm0, %v1344_v2, 0.0  ;;  %v1345_v4 = vadd.f32 %v2986_v0, %v1337_v54 }
 0xf96   :  { %1347 = vadd.xlane.f32.xlu0 %v1346_v3 }
 0xf97   :  { %v1349_v5 = vsel %vm94_vm0, %v1345_v4, 0.0 }
 0xf98   :  { %1350 = vadd.xlane.f32.xlu1 %v1349_v5 }
0x1023   :  { %v1348_v42 = vpop.xlane.xlu0 %1347 }
0x1024   :  { %v1352_v6 = vmul.f32 0.03125, %v1348_v42 }
0x1025   :  { %v1351_v7 = vpop.xlane.xlu1 %1350 }
0x1026   :  { %v1354_v8 = vsub.f32 %v1344_v2, %v1352_v6  ;;  %v1353_v9 = vmul.f32 0.03125, %v1351_v7 }
0x1028   :  { %v1355_v10 = vsub.f32 %v1345_v4, %v1353_v9  ;;  %v1356_v11 = vmul.f32 %v1354_v8, %v1354_v8 }
0x102a   :  { %v1358_v39 = vsel %vm94_vm0, %v1356_v11, 0.0  ;;  %v1357_v12 = vmul.f32 %v1355_v10, %v1355_v10 }
0x102b   :  { %1359 = vadd.xlane.f32.xlu0 %v1358_v39 }
0x102c   :  { %v1361_v13 = vsel %vm94_vm0, %v1357_v12, 0.0 }
0x102d   :  { %1362 = vadd.xlane.f32.xlu1 %v1361_v13 }
0x10b8   :  { %v1360_v25 = vpop.xlane.xlu0 %1359 }
0x10b9   :  { %v1364_v26 = vmul.f32 0.03125, %v1360_v25 }
0x10ba   :  { %v1363_v27 = vpop.xlane.xlu1 %1362 }
0x10bb   :  { %v1366_v28 = vadd.f32 1e-05, %v1364_v26  ;;  %v1365_v29 = vmul.f32 0.03125, %v1363_v27 }
0x10bd   :  { %3534 = vrsqrt.f32 %v1366_v28  ;;  %v1367_v30 = vadd.f32 1e-05, %v1365_v29  ;;  %v3582_v29 = vld [vmem:[%s4397_s1] ss:$0 sm:$0xff] }
0x10bf   :  { %3536 = vrsqrt.f32 %v1367_v30 }
0x10c7   :  { %v3535_v33 = vpop.eup %3534 }
0x10c8   :  { %v1370_v35 = vmul.f32 %v3535_v33, %v1354_v8 }
0x10c9   :  { %v3537_v36 = vpop.eup %3536 }
0x10ca   :  { %v1378_v37 = vmul.f32 %v2987_v34, %v1370_v35  ;;  %v1371_v38 = vmul.f32 %v3537_v36, %v1355_v10  ;;  %v3583_v35 = vld [vmem:[%s4372_s2] ss:$0 sm:$0xff] }
0x10cc   :  { %v1379_v41 = vmul.f32 %v2987_v34, %v1371_v38  ;;  %v1386_v43 = vadd.f32 %v2988_v40, %v1378_v37 }
0x10ce   :  { %v1387_v44 = vadd.f32 %v2988_v40, %v1379_v41  ;;  %v3584_v41 = vld [vmem:[%s4378_s8] ss:$0 sm:$0xff] }
0x10d0   :  { %v1388_v45 = vpack.c.bf16 %v1387_v44, %v1386_v43 }
0x10d2   :  { %3277 = vmatmul.mubr.msk.bf16.vlgmr.msra.gmra.mrb[44].mxu1 %vm94_vm0, %v1388_v45 }
0x10d3   :  { %3301 = vmatpush3.bf16.msra.mxu1 %v3735_v14  ;;  %3304 = vmatprep.mubr.msk.bf16.mxu1 %vm3617_vm1, %v3616_v15  ;;  %v4061_v14 = vld [vmem:[%s4383_s13 + $0x38] sm:$0xff]  }
0x10d4   :  { %3302 = vmatprep.subr.bf16.mxu1 %v3616_v15  ;;  %3295 = vmatpush3.bf16.msra.mxu0 %v4061_v14 }
0x10d5   :  { %3326 = vmatprep.subr.bf16.mxu0 %v3616_v15 }
0x10d7   :  { %3303 = vmatpush3.bf16.msra.mxu1 %v3743_v16  ;;  %v2989_v16 = vld [vmem:[%s4382_s12] ss:$0 sm:$0xff] }
0x10d8   :  { %3308 = vmatprep.subr.bf16.mxu1 %v3616_v15 }
0x11a5   :  { %v1444_v47 = vpop.f32.mrb[44].mxu1 }
0x11a6   :  { %v1445_v48 = vadd.f32 %v2989_v16, %v1444_v47  ;;  %v3278_v49 = vpop.f32.mrb[45].mxu1 }
0x11a7   :  { %v1447_v50 = vpop.f32.mrb[46].mxu1 }
0x11a8   :  { %v1448_v52 = vadd.f32 %v2989_v16, %v1447_v50  ;;  %v3279_v53 = vpop.f32.mrb[47].mxu1  ;;  %v1451_v31 = vmax.f32 %v1445_v48, 0.0 }
0x11aa   :  { %v1452_v55 = vmax.f32 %v1448_v52, 0.0 }
0x11ac   :  { %v1453_v32 = vpack.c.bf16 %v1452_v55, %v1451_v31 }
0x11ae   :  { %3297 = vmatmul.mubr.bf16.vlgmr.msra.gmra.mrb[40].mxu0 %v1453_v32 }
0x11af   :  { %3328 = vmatprep.mubr.msk.bf16.mxu0 %vm3617_vm1, %v3616_v15 }
0x1281   :  { %v1542_v57 = vpop.f32.mrb[40].mxu0 }
0x1282   :  { %v1543_v58 = vadd.f32 %v2993_v56, %v1542_v57  ;;  %v3298_v59 = vpop.f32.mrb[41].mxu0 }
0x1283   :  { %v1545_v60 = vpop.f32.mrb[42].mxu0 }
0x1284   :  { %v1546_v61 = vadd.f32 %v2993_v56, %v1545_v60  ;;  %v3299_v62 = vpop.f32.mrb[43].mxu0  ;;  %v1549_v63 = vadd.f32 %v1543_v58, %v1386_v43 }
0x1286   :  { %v1551_v0 = vsel %vm94_vm0, %v1549_v63, 0.0  ;;  %v1550_v1 = vadd.f32 %v1546_v61, %v1387_v44 }
0x1287   :  { %1552 = vadd.xlane.f32.xlu0 %v1551_v0 }
0x1288   :  { %v1554_v51 = vsel %vm94_vm0, %v1550_v1, 0.0 }
0x1289   :  { %1555 = vadd.xlane.f32.xlu1 %v1554_v51 }
0x1314   :  { %v1553_v2 = vpop.xlane.xlu0 %1552 }
0x1315   :  { %v1557_v54 = vmul.f32 0.03125, %v1553_v2 }
0x1316   :  { %v1556_v3 = vpop.xlane.xlu1 %1555 }
0x1317   :  { %v1559_v4 = vsub.f32 %v1549_v63, %v1557_v54  ;;  %v1558_v5 = vmul.f32 0.03125, %v1556_v3 }
0x1319   :  { %v1560_v42 = vsub.f32 %v1550_v1, %v1558_v5  ;;  %v1561_v6 = vmul.f32 %v1559_v4, %v1559_v4 }
0x131b   :  { %v1563_v7 = vsel %vm94_vm0, %v1561_v6, 0.0  ;;  %v1562_v8 = vmul.f32 %v1560_v42, %v1560_v42 }
0x131c   :  { %1564 = vadd.xlane.f32.xlu0 %v1563_v7 }
0x131d   :  { %v1566_v9 = vsel %vm94_vm0, %v1562_v8, 0.0 }
0x131e   :  { %1567 = vadd.xlane.f32.xlu1 %v1566_v9 }
0x13a9   :  { %v1565_v10 = vpop.xlane.xlu0 %1564 }
0x13aa   :  { %v1569_v11 = vmul.f32 0.03125, %v1565_v10 }
0x13ab   :  { %v1568_v39 = vpop.xlane.xlu1 %1567 }
0x13ac   :  { %v1571_v12 = vadd.f32 1e-05, %v1569_v11  ;;  %v1570_v13 = vmul.f32 0.03125, %v1568_v39 }
0x13ae   :  { %3538 = vrsqrt.f32 %v1571_v12  ;;  %v1572_v25 = vadd.f32 1e-05, %v1570_v13 }
0x13b0   :  { %3540 = vrsqrt.f32 %v1572_v25 }
0x13b8   :  { %v3539_v26 = vpop.eup %3538 }
0x13b9   :  { %v1575_v27 = vmul.f32 %v3539_v26, %v1559_v4 }
0x13ba   :  { %v3541_v28 = vpop.eup %3540 }
0x13bb   :  { %v1577_v30 = vmul.f32 %v3582_v29, %v1575_v27  ;;  %v1576_v33 = vmul.f32 %v3541_v28, %v1560_v42 }
0x13bd   :  { %v1578_v34 = vmul.f32 %v3582_v29, %v1576_v33  ;;  %v4083_v36 = vadd.f32 %v3583_v35, %v1577_v30 }
0x13bf   :  { %v4085_v37 = vadd.f32 %v3583_v35, %v1578_v34 }
0x13c1   :  { %v1581_v38 = vpack.c.bf16 %v4085_v37, %v4083_v36 }
0x13c3   :  { %3305 = vmatmul.mubr.msk.bf16.vlgmr.msra.gmra.mrb[48].mxu1 %vm94_vm0, %v1581_v38 }
0x13c4   :  { %3310 = vmatprep.mubr.msk.bf16.mxu1 %vm3617_vm1, %v3616_v15 }
0x1496   :  { %v1619_v40 = vpop.f32.mrb[48].mxu1 }
0x1497   :  { %v1620_v43 = vadd.f32 %v3584_v41, %v1619_v40  ;;  %v3306_v44 = vpop.f32.mrb[49].mxu1 }
0x1498   :  { %v1622_v45 = vpop.f32.mrb[50].mxu1 }
0x1499   :  { %v4095_v16 = vpack.c.bf16 %v1620_v43, %v1620_v43  ;;  %v1623_v47 = vadd.f32 %v3584_v41, %v1622_v45  ;;  %v3307_v48 = vpop.f32.mrb[51].mxu1 }
0x149b   :  { %v4097_v49 = vpack.c.bf16 %v1623_v47, %v1623_v47  ;;  %1629 = vrot.lane.b32.xlu0 %v4095_v16, %s3618_s24 }
0x149d   :  { %1678 = vrot.lane.b32.xlu1 %v4097_v49, %s3618_s24 }
0x150d   :  { %v1630_v50 = vpop.permute.xlu0 %1629 }
0x150e   :  { %v1635_v52 = vsel %vm206_vm2, %v1630_v50, 0 }
0x150f   :  { %3309 = vmatpush3.bf16.xpose.msra.mxu1 %v1635_v52  ;;  %v1679_v53 = vpop.permute.xlu1 %1678 }
0x1510   :  { %3314 = vmatprep.subr.bf16.mxu1 %v3616_v15  ;;  %v1684_v31 = vsel %vm206_vm2, %v1679_v53, 0 }
0x1516   :  { %3311 = vmatmul.mubr.msk.bf16.vlgmr.msra.gmra.mrb[52].mxu1 %vm206_vm2, %v4095_v16 }
0x1517   :  { %3315 = vmatpush3.bf16.xpose.msra.mxu1 %v1684_v31  ;;  %3316 = vmatprep.mubr.msk.bf16.mxu1 %vm3617_vm1, %v3616_v15 }
0x1518   :  { %3320 = vmatprep.subr.bf16.mxu1 %v3616_v15 }
0x151e   :  { %3317 = vmatmul.mubr.msk.bf16.vlgmr.msra.gmra.mrb[56].mxu1 %vm206_vm2, %v4097_v49 }
0x151f   :  { %3322 = vmatprep.mubr.msk.bf16.mxu1 %vm3617_vm1, %v3616_v15 }
0x15e9   :  { %v1671_v55 = vpop.f32.mrb[52].mxu1 }
0x15ea   :  { %v1726_v32 = vmul.f32 0.35355338, %v1671_v55  ;;  %v3312_v56 = vpop.f32.mrb[53].mxu1 }
0x15eb   :  { %v1674_v57 = vpop.f32.mrb[54].mxu1 }
0x15ec   :  { %v3313_v58 = vpop.f32.mrb[55].mxu1  ;;  %v1728_v59 = vsel %vm206_vm2, %v1726_v32, -inf }
0x15ed   :  { %1729 = vmax.xlane.f32.xlu1 %v1728_v59 }
0x15f1   :  { %v1720_v60 = vpop.f32.mrb[56].mxu1 }
0x15f2   :  { %v1727_v61 = vmul.f32 0.35355338, %v1720_v60  ;;  %v3318_v62 = vpop.f32.mrb[57].mxu1 }
0x15f3   :  { %v1723_v63 = vpop.f32.mrb[58].mxu1 }
0x15f4   :  { %v3319_v0 = vpop.f32.mrb[59].mxu1  ;;  %v1731_v1 = vsel %vm206_vm2, %v1727_v61, -inf }
0x15f5   :  { %1732 = vmax.xlane.f32.xlu0 %v1731_v1 }
0x15fe   :  { %1800 = vrot.lane.b32.xlu1 %v4097_v49, %s3619_s25 }
0x1602   :  { %1852 = vrot.lane.b32.xlu1 %v4095_v16, %s3620_s26 }
0x167a   :  { %v1730_v51 = vpop.xlane.xlu1 %1729 }
0x167b   :  { %v1734_v2 = vsub.f32 %v1726_v32, %v1730_v51 }
0x167d   :  { %v1736_v54 = vmul.f32 1.442695, %v1734_v2 }
0x167e   :  { %v1801_v3 = vpop.permute.xlu1 %1800 }
0x167f   :  { %3542 = vpow2.f32 %v1736_v54  ;;  %v1806_v4 = vsel %vm333_vm3, %v1801_v3, 0 }
0x1680   :  { %3327 = vmatpush3.bf16.msra.mxu0 %v1806_v4 }
0x1681   :  { %3338 = vmatprep.subr.bf16.mxu0 %v3616_v15 }
0x1682   :  { %v1733_v5 = vpop.xlane.xlu0 %1732  ;;  %v1853_v39 = vpop.permute.xlu1 %1852 }
0x1683   :  { %v1735_v42 = vsub.f32 %v1727_v61, %v1733_v5  ;;  %v1858_v29 = vsel %vm206_vm2, %v1853_v39, 0 }
0x1685   :  { %v1738_v6 = vmul.f32 1.442695, %v1735_v42 }
0x1687   :  { %3544 = vpow2.f32 %v1738_v6 }
0x1689   :  { %v3543_v7 = vpop.eup %3542 }
0x168a   :  { %v1740_v8 = vsel %vm206_vm2, %v3543_v7, 0.0 }
0x168b   :  { %1741 = vadd.xlane.f32.xlu0 %v1740_v8 }
0x1691   :  { %v3545_v9 = vpop.eup %3544 }
0x1692   :  { %v1743_v10 = vsel %vm206_vm2, %v3545_v9, 0.0 }
0x1693   :  { %1744 = vadd.xlane.f32.xlu1 %v1743_v10 }
0x16a1   :  { %1752 = vrot.lane.b32.xlu0 %v4095_v16, %s3619_s25 }
0x16a4   :  { %1902 = vrot.lane.b32.xlu1 %v4097_v49, %s3620_s26  ;;  %s4398_s26 = smov 104  }
0x16a5   :  { %1850 = vrot.lane.b32.xlu0 %v4095_v16, %s3621_s27 }
0x16a8   :  { %1900 = vrot.lane.b32.xlu1 %v4097_v49, %s3621_s27 }
0x1718   :  { %v1742_v11 = vpop.xlane.xlu0 %1741 }
0x1719   :  { %3546 = vrcp.f32 %v1742_v11 }
0x171c   :  { %v1753_v12 = vpop.permute.xlu0 %1752 }
0x171d   :  { %v1758_v13 = vsel %vm333_vm3, %v1753_v12, 0 }
0x171e   :  { %3321 = vmatpush3.bf16.msra.mxu1 %v1758_v13 }
0x171f   :  { %3332 = vmatprep.subr.bf16.mxu1 %v3616_v15 }
0x1720   :  { %v1745_v25 = vpop.xlane.xlu1 %1744  ;;  %v1851_v38 = vpop.permute.xlu0 %1850 }
0x1721   :  { %3548 = vrcp.f32 %v1745_v25 }
0x1723   :  { %v3547_v26 = vpop.eup %3546 }
0x1724   :  { %v1748_v27 = vmul.f32 %v3547_v26, %v3543_v7  ;;  %v1903_v34 = vpop.permute.xlu1 %1902 }
0x1725   :  { %v1908_v40 = vsel %vm206_vm2, %v1903_v34, 0 }
0x1726   :  { %v1750_v28 = vpack.c.bf16 %v1748_v27, %v1748_v27 }
0x1728   :  { %3323 = vmatmul.mubr.msk.bf16.vlgmr.msra.gmra.mrb[60].mxu1 %vm206_vm2, %v1750_v28  ;;  %v1901_v41 = vpop.permute.xlu1 %1900 }
0x1729   :  { %3333 = vmatpush3.bf16.xpose.msra.mxu1 %v1858_v29  ;;  %3334 = vmatprep.mubr.msk.bf16.mxu1 %vm3617_vm1, %v3616_v15  ;;  %v1849_v29 = vld [vmem:[%s4379_s9] sm:$0xf] }
0x172a   :  { %3344 = vmatprep.subr.bf16.mxu1 %v3616_v15  ;;  %v2125_v34 = vsel %vm333_vm3, %v1849_v29, 0 }
0x172b   :  { %v3549_v30 = vpop.eup %3548 }
0x172c   :  { %v1749_v33 = vmul.f32 %v3549_v30, %v3545_v9 }
0x172e   :  { %v1751_v35 = vpack.c.bf16 %v1749_v33, %v1749_v33 }
0x1730   :  { %3329 = vmatmul.mubr.msk.bf16.vlgmr.msra.gmra.mrb[44].mxu0 %vm206_vm2, %v1751_v35  ;;  %3335 = vmatmul.mubr.msk.bf16.vlgmr.msra.gmra.mrb[64].mxu1 %vm206_vm2, %v1851_v38 }
0x1731   :  { %3339 = vmatpush3.bf16.xpose.msra.mxu0 %v1908_v40  ;;  %3340 = vmatprep.mubr.msk.bf16.mxu0 %vm3617_vm1, %v3616_v15 }
0x1732   :  { %3350 = vmatprep.subr.bf16.mxu0 %v3616_v15  ;;  %3346 = vmatprep.mubr.msk.bf16.mxu1 %vm3617_vm1, %v3616_v15 }
0x1738   :  { %3341 = vmatmul.mubr.msk.bf16.vlgmr.msra.gmra.mrb[48].mxu0 %vm206_vm2, %v1901_v41 }
0x1739   :  { %3352 = vmatprep.mubr.msk.bf16.mxu0 %vm3617_vm1, %v3616_v15 }
0x17fb   :  { %v4151_v43 = vpop.f32.mrb[60].mxu1 }
0x17fc   :  { %v3324_v44 = vpop.f32.mrb[61].mxu1 }
0x17fd   :  { %v1797_v45 = vpop.f32.mrb[62].mxu1 }
0x17fe   :  { %v3325_v47 = vpop.f32.mrb[63].mxu1 }
0x1803   :  { %v4153_v48 = vpop.f32.mrb[44].mxu0  ;;  %v1894_v50 = vpop.f32.mrb[64].mxu1 }
0x1804   :  { %v1848_v52 = vpack.c.bf16 %v4153_v48, %v4151_v43  ;;  %v1950_v53 = vmul.f32 0.35355338, %v1894_v50  ;;  %v3330_v31 = vpop.f32.mrb[45].mxu0  ;;  %v3336_v55 = vpop.f32.mrb[65].mxu1  ;;  %v3011_v43 = vld [vmem:[%s4379_s9 + $0x4] sm:$0xf] }
0x1805   :  { %v1845_v32 = vpop.f32.mrb[46].mxu0  ;;  %v1897_v56 = vpop.f32.mrb[66].mxu1  ;;  %v2078_v44 = vsel %vm333_vm3, %v3011_v43, 0 }
0x1806   :  { %v3331_v57 = vpop.f32.mrb[47].mxu0  ;;  %v3337_v58 = vpop.f32.mrb[67].mxu1  ;;  %v1952_v59 = vsel %vm206_vm2, %v1950_v53, -inf }
0x1807   :  { %1953 = vmax.xlane.f32.xlu0 %v1952_v59 }
0x180b   :  { %v1944_v60 = vpop.f32.mrb[48].mxu0 }
0x180c   :  { %v1951_v61 = vmul.f32 0.35355338, %v1944_v60  ;;  %v3342_v62 = vpop.f32.mrb[49].mxu0 }
0x180d   :  { %v1947_v63 = vpop.f32.mrb[50].mxu0 }
0x180e   :  { %v3343_v0 = vpop.f32.mrb[51].mxu0  ;;  %v1955_v1 = vsel %vm206_vm2, %v1951_v61, -inf }
0x180f   :  { %1956 = vmax.xlane.f32.xlu1 %v1955_v1 }
0x1820   :  { %2024 = vrot.lane.b32.xlu1 %v4097_v49, %s3622_s28 }
0x1824   :  { %2170 = vrot.lane.b32.xlu1 %v4095_v16, %s3623_s29 }
0x1828   :  { %2220 = vrot.lane.b32.xlu1 %v4097_v49, %s3623_s29  ;;  %s4399_s29 = smov 40  }
0x182c   :  { %2218 = vrot.lane.b32.xlu1 %v4097_v49, %s3624_s0 }
0x1894   :  { %v1954_v51 = vpop.xlane.xlu0 %1953 }
0x1895   :  { %v1958_v2 = vsub.f32 %v1950_v53, %v1954_v51 }
0x1897   :  { %v1960_v54 = vmul.f32 1.442695, %v1958_v2 }
0x1899   :  { %3550 = vpow2.f32 %v1960_v54 }
0x189c   :  { %v1957_v3 = vpop.xlane.xlu1 %1956 }
0x189d   :  { %v1959_v4 = vsub.f32 %v1951_v61, %v1957_v3 }
0x189f   :  { %v1962_v5 = vmul.f32 1.442695, %v1959_v4 }
0x18a0   :  { %v2025_v42 = vpop.permute.xlu1 %2024 }
0x18a1   :  { %3552 = vpow2.f32 %v1962_v5  ;;  %v2030_v6 = vsel %vm333_vm3, %v2025_v42, 0 }
0x18a2   :  { %3351 = vmatpush3.bf16.msra.mxu0 %v2030_v6 }
0x18a3   :  { %v3551_v7 = vpop.eup %3550  ;;  %3362 = vmatprep.subr.bf16.mxu0 %v3616_v15 }
0x18a4   :  { %v1964_v8 = vsel %vm206_vm2, %v3551_v7, 0.0  ;;  %v2171_v35 = vpop.permute.xlu1 %2170 }
0x18a5   :  { %1965 = vadd.xlane.f32.xlu0 %v1964_v8  ;;  %v2176_v32 = vsel %vm206_vm2, %v2171_v35, 0 }
0x18a8   :  { %v2221_v38 = vpop.permute.xlu1 %2220 }
0x18a9   :  { %v2226_v40 = vsel %vm206_vm2, %v2221_v38, 0 }
0x18ab   :  { %v3553_v9 = vpop.eup %3552 }
0x18ac   :  { %v1967_v10 = vsel %vm206_vm2, %v3553_v9, 0.0  ;;  %v2219_v41 = vpop.permute.xlu1 %2218 }
0x18ad   :  { %1968 = vadd.xlane.f32.xlu0 %v1967_v10 }
0x18c3   :  { %1976 = vrot.lane.b32.xlu0 %v4095_v16, %s3622_s28 }
0x18c7   :  { %2168 = vrot.lane.b32.xlu0 %v4095_v16, %s3624_s0 }
0x1932   :  { %v1966_v11 = vpop.xlane.xlu0 %1965 }
0x1933   :  { %3554 = vrcp.f32 %v1966_v11 }
0x193a   :  { %v1969_v39 = vpop.xlane.xlu0 %1968 }
0x193b   :  { %3556 = vrcp.f32 %v1969_v39 }
0x193d   :  { %v3555_v12 = vpop.eup %3554 }
0x193e   :  { %v1972_v13 = vmul.f32 %v3555_v12, %v3551_v7  ;;  %v1977_v25 = vpop.permute.xlu0 %1976 }
0x193f   :  { %v1982_v26 = vsel %vm333_vm3, %v1977_v25, 0 }
0x1940   :  { %3345 = vmatpush3.bf16.msra.mxu1 %v1982_v26  ;;  %v1974_v27 = vpack.c.bf16 %v1972_v13, %v1972_v13 }
0x1941   :  { %3356 = vmatprep.subr.bf16.mxu1 %v3616_v15 }
0x1942   :  { %v2169_v59 = vpop.permute.xlu0 %2168 }
0x1943   :  { %3347 = vmatmul.mubr.msk.bf16.vlgmr.msra.gmra.mrb[68].mxu1 %vm206_vm2, %v1974_v27 }
0x1944   :  { %3358 = vmatprep.mubr.msk.bf16.mxu1 %vm3617_vm1, %v3616_v15  ;;  %3357 = vmatpush3.bf16.msra.mxu1 %v2078_v44 }
0x1945   :  { %v3557_v28 = vpop.eup %3556  ;;  %3368 = vmatprep.subr.bf16.mxu1 %v3616_v15 }
0x1946   :  { %v1973_v30 = vmul.f32 %v3557_v28, %v3553_v9 }
0x1948   :  { %v1975_v33 = vpack.c.bf16 %v1973_v30, %v1973_v30 }
0x194a   :  { %3353 = vmatmul.mubr.msk.bf16.vlgmr.msra.gmra.mrb[52].mxu0 %vm206_vm2, %v1975_v33 }
0x194b   :  { %3363 = vmatpush3.bf16.msra.mxu0 %v2125_v34  ;;  %3364 = vmatprep.mubr.msk.bf16.mxu0 %vm3617_vm1, %v3616_v15 }
0x194c   :  { %3374 = vmatprep.subr.bf16.mxu0 %v3616_v15 }
0x1952   :  { %3365 = vmatmul.mubr.msk.bf16.vlgmr.msra.gmra.mrb[56].mxu0 %vm206_vm2, %v1848_v52 }
0x1953   :  { %3376 = vmatprep.mubr.msk.bf16.mxu0 %vm3617_vm1, %v3616_v15 }
0x1954   :  { %3375 = vmatpush3.bf16.xpose.msra.mxu0 %v2226_v40 }
0x1955   :  { %3386 = vmatprep.subr.bf16.mxu0 %v3616_v15 }
0x195b   :  { %3377 = vmatmul.mubr.msk.bf16.vlgmr.msra.gmra.mrb[60].mxu0 %vm206_vm2, %v2219_v41 }
0x195c   :  { %3388 = vmatprep.mubr.msk.bf16.mxu0 %vm3617_vm1, %v3616_v15 }
0x1a16   :  { %v2018_v45 = vpop.f32.mrb[68].mxu1 }
0x1a17   :  { %v3348_v47 = vpop.f32.mrb[69].mxu1 }
0x1a18   :  { %v2021_v48 = vpop.f32.mrb[70].mxu1 }
0x1a19   :  { %v3349_v50 = vpop.f32.mrb[71].mxu1 }
0x1a1d   :  { %v2066_v52 = vpop.f32.mrb[52].mxu0 }
0x1a1e   :  { %v2072_v53 = vpack.c.bf16 %v2066_v52, %v2018_v45  ;;  %v3354_v31 = vpop.f32.mrb[53].mxu0 }
0x1a1f   :  { %v2069_v55 = vpop.f32.mrb[54].mxu0 }
0x1a20   :  { %v3355_v56 = vpop.f32.mrb[55].mxu0  ;;  %3359 = vmatmul.mubr.msk.bf16.vlgmr.msra.gmra.mrb[72].mxu1 %vm206_vm2, %v2072_v53 }
0x1a21   :  { %3369 = vmatpush3.bf16.xpose.msra.mxu1 %v2176_v32  ;;  %3370 = vmatprep.mubr.msk.bf16.mxu1 %vm3617_vm1, %v3616_v15 }
0x1a22   :  { %3380 = vmatprep.subr.bf16.mxu1 %v3616_v15 }
0x1a25   :  { %v2161_v57 = vpop.f32.mrb[56].mxu0 }
0x1a26   :  { %v3366_v58 = vpop.f32.mrb[57].mxu0 }
0x1a27   :  { %v2164_v60 = vpop.f32.mrb[58].mxu0 }
0x1a28   :  { %v3367_v61 = vpop.f32.mrb[59].mxu0  ;;  %3371 = vmatmul.mubr.msk.bf16.vlgmr.msra.gmra.mrb[76].mxu1 %vm206_vm2, %v2169_v59 }
0x1a29   :  { %3382 = vmatprep.mubr.msk.bf16.mxu1 %vm3617_vm1, %v3616_v15 }
0x1a2e   :  { %v2262_v62 = vpop.f32.mrb[60].mxu0 }
0x1a2f   :  { %v2269_v63 = vmul.f32 0.35355338, %v2262_v62  ;;  %v3378_v0 = vpop.f32.mrb[61].mxu0 }
0x1a30   :  { %v2265_v1 = vpop.f32.mrb[62].mxu0 }
0x1a31   :  { %v3379_v51 = vpop.f32.mrb[63].mxu0  ;;  %v2273_v2 = vsel %vm206_vm2, %v2269_v63, -inf }
0x1a32   :  { %2274 = vmax.xlane.f32.xlu1 %v2273_v2 }
0x1a43   :  { %2342 = vrot.lane.b32.xlu1 %v4097_v49, %s3625_s20 }
0x1a47   :  { %2443 = vrot.lane.b32.xlu1 %v4095_v16, %s3626_s21 }
0x1a4b   :  { %2493 = vrot.lane.b32.xlu1 %v4097_v49, %s3626_s21 }
0x1a4f   :  { %2491 = vrot.lane.b32.xlu1 %v4097_v49, %s4398_s26 }
0x1abf   :  { %v2275_v54 = vpop.xlane.xlu1 %2274 }
0x1ac0   :  { %v2277_v5 = vsub.f32 %v2269_v63, %v2275_v54 }
0x1ac2   :  { %v2280_v42 = vmul.f32 1.442695, %v2277_v5 }
0x1ac3   :  { %v2343_v3 = vpop.permute.xlu1 %2342 }
0x1ac4   :  { %v2348_v4 = vsel %vm333_vm3, %v2343_v3, 0  ;;  %3558 = vpow2.f32 %v2280_v42 }
0x1ac5   :  { %3387 = vmatpush3.bf16.msra.mxu0 %v2348_v4 }
0x1ac6   :  { %3398 = vmatprep.subr.bf16.mxu0 %v3616_v15 }
0x1ac7   :  { %v2444_v44 = vpop.permute.xlu1 %2443 }
0x1ac8   :  { %v2449_v47 = vsel %vm206_vm2, %v2444_v44, 0 }
0x1acb   :  { %v2494_v54 = vpop.permute.xlu1 %2493 }
0x1ace   :  { %v3559_v28 = vpop.eup %3558 }
0x1acf   :  { %v2285_v29 = vsel %vm206_vm2, %v3559_v28, 0.0 }
0x1af3   :  { %v2114_v6 = vpop.f32.mrb[72].mxu1 }
0x1af4   :  { %v4223_v7 = vadd.f32 %v2161_v57, %v2114_v6  ;;  %v3360_v8 = vpop.f32.mrb[73].mxu1  ;;  %v2499_v6 = vsel %vm206_vm2, %v2494_v54, 0 }
0x1af5   :  { %v2117_v9 = vpop.f32.mrb[74].mxu1 }
0x1af6   :  { %v4225_v10 = vadd.f32 %v2164_v60, %v2117_v9  ;;  %v3361_v11 = vpop.f32.mrb[75].mxu1  ;;  %v3018_v60 = vld [vmem:[%s4379_s9 + $0x8] sm:$0xf]  ;;  %v2492_v9 = vpop.permute.xlu1 %2491 }
0x1af7   :  { %v2396_v61 = vsel %vm333_vm3, %v3018_v60, 0 }
0x1afb   :  { %v2212_v39 = vpop.f32.mrb[76].mxu1 }
0x1afc   :  { %v2268_v12 = vmul.f32 0.35355338, %v2212_v39  ;;  %v3372_v13 = vpop.f32.mrb[77].mxu1 }
0x1afd   :  { %v2215_v25 = vpop.f32.mrb[78].mxu1 }
0x1afe   :  { %v3373_v26 = vpop.f32.mrb[79].mxu1  ;;  %v2270_v27 = vsel %vm206_vm2, %v2268_v12, -inf }
0x1aff   :  { %2271 = vmax.xlane.f32.xlu0 %v2270_v27 }
0x1b03   :  { %2286 = vadd.xlane.f32.xlu0 %v2285_v29 }
0x1b8c   :  { %v2272_v30 = vpop.xlane.xlu0 %2271 }
0x1b8d   :  { %v2276_v33 = vsub.f32 %v2268_v12, %v2272_v30 }
0x1b8f   :  { %v2278_v34 = vmul.f32 1.442695, %v2276_v33 }
0x1b90   :  { %v2287_v35 = vpop.xlane.xlu0 %2286 }
0x1b91   :  { %3560 = vpow2.f32 %v2278_v34 }
0x1b92   :  { %3562 = vrcp.f32 %v2287_v35 }
0x1b9b   :  { %v3561_v38 = vpop.eup %3560 }
0x1b9c   :  { %v3563_v40 = vpop.eup %3562  ;;  %v2282_v41 = vsel %vm206_vm2, %v3561_v38, 0.0 }
0x1b9d   :  { %v2291_v43 = vmul.f32 %v3563_v40, %v3559_v28  ;;  %2283 = vadd.xlane.f32.xlu0 %v2282_v41 }
0x1b9f   :  { %v2293_v45 = vpack.c.bf16 %v2291_v43, %v2291_v43 }
0x1ba1   :  { %3389 = vmatmul.mubr.msk.bf16.vlgmr.msra.gmra.mrb[64].mxu0 %vm206_vm2, %v2293_v45 }
0x1ba2   :  { %3399 = vmatpush3.bf16.xpose.msra.mxu0 %v2449_v47  ;;  %3400 = vmatprep.mubr.msk.bf16.mxu0 %vm3617_vm1, %v3616_v15 }
0x1ba3   :  { %3410 = vmatprep.subr.bf16.mxu0 %v3616_v15 }
0x1bb3   :  { %2294 = vrot.lane.b32.xlu0 %v4095_v16, %s3625_s20 }
0x1bb7   :  { %2441 = vrot.lane.b32.xlu0 %v4095_v16, %s4398_s26 }
0x1c2a   :  { %v2284_v48 = vpop.xlane.xlu0 %2283 }
0x1c2b   :  { %3564 = vrcp.f32 %v2284_v48 }
0x1c2e   :  { %v2295_v50 = vpop.permute.xlu0 %2294 }
0x1c2f   :  { %v2300_v52 = vsel %vm333_vm3, %v2295_v50, 0 }
0x1c30   :  { %3381 = vmatpush3.bf16.msra.mxu1 %v2300_v52 }
0x1c31   :  { %3392 = vmatprep.subr.bf16.mxu1 %v3616_v15 }
0x1c32   :  { %v2442_v53 = vpop.permute.xlu0 %2441 }
0x1c33   :  { %3401 = vmatmul.mubr.msk.bf16.vlgmr.msra.gmra.mrb[68].mxu0 %vm206_vm2, %v2442_v53 }
0x1c34   :  { %3412 = vmatprep.mubr.msk.bf16.mxu0 %vm3617_vm1, %v3616_v15 }
0x1c35   :  { %v3565_v31 = vpop.eup %3564 }
0x1c36   :  { %v2290_v55 = vmul.f32 %v3565_v31, %v3561_v38 }
0x1c38   :  { %v2292_v32 = vpack.c.bf16 %v2290_v55, %v2290_v55 }
0x1c3a   :  { %3383 = vmatmul.mubr.msk.bf16.vlgmr.msra.gmra.mrb[80].mxu1 %vm206_vm2, %v2292_v32 }
0x1c3b   :  { %3394 = vmatprep.mubr.msk.bf16.mxu1 %vm3617_vm1, %v3616_v15  ;;  %3393 = vmatpush3.bf16.msra.mxu1 %v2396_v61 }
0x1c3c   :  { %3404 = vmatprep.subr.bf16.mxu1 %v3616_v15 }
0x1c74   :  { %v2384_v56 = vpop.f32.mrb[64].mxu0 }
0x1c75   :  { %v3390_v57 = vpop.f32.mrb[65].mxu0 }
0x1c76   :  { %v2387_v58 = vpop.f32.mrb[66].mxu0 }
0x1c77   :  { %v3391_v59 = vpop.f32.mrb[67].mxu0 }
0x1c78   :  { %v3024_v59 = vld [vmem:[%s4379_s9 + $0xc] sm:$0xf] }
0x1c79   :  { %v2669_v60 = vsel %vm333_vm3, %v3024_v59, 0 }
0x1d06   :  { %v2485_v62 = vpop.f32.mrb[68].mxu0 }
0x1d07   :  { %v2541_v63 = vmul.f32 0.35355338, %v2485_v62  ;;  %v3402_v0 = vpop.f32.mrb[69].mxu0 }
0x1d08   :  { %v2488_v1 = vpop.f32.mrb[70].mxu0 }
0x1d09   :  { %v3403_v51 = vpop.f32.mrb[71].mxu0  ;;  %v2543_v2 = vsel %vm206_vm2, %v2541_v63, -inf }
0x1d0a   :  { %2544 = vmax.xlane.f32.xlu0 %v2543_v2 }
0x1d0d   :  { %v2336_v3 = vpop.f32.mrb[80].mxu1 }
0x1d0e   :  { %v2390_v4 = vpack.c.bf16 %v2384_v56, %v2336_v3  ;;  %v3384_v5 = vpop.f32.mrb[81].mxu1 }
0x1d0f   :  { %v2339_v42 = vpop.f32.mrb[82].mxu1 }
0x1d10   :  { %v3385_v8 = vpop.f32.mrb[83].mxu1  ;;  %3395 = vmatmul.mubr.msk.bf16.vlgmr.msra.gmra.mrb[84].mxu1 %vm206_vm2, %v2390_v4 }
0x1d11   :  { %3405 = vmatpush3.bf16.xpose.msra.mxu1 %v2499_v6  ;;  %3406 = vmatprep.mubr.msk.bf16.mxu1 %vm3617_vm1, %v3616_v15 }
0x1d12   :  { %3416 = vmatprep.subr.bf16.mxu1 %v3616_v15 }
0x1d18   :  { %3407 = vmatmul.mubr.msk.bf16.vlgmr.msra.gmra.mrb[88].mxu1 %vm206_vm2, %v2492_v9 }
0x1d19   :  { %3418 = vmatprep.mubr.msk.bf16.mxu1 %vm3617_vm1, %v3616_v15 }
0x1d97   :  { %v2545_v11 = vpop.xlane.xlu0 %2544 }
0x1d98   :  { %v2549_v39 = vsub.f32 %v2541_v63, %v2545_v11 }
0x1d9a   :  { %v2551_v12 = vmul.f32 1.442695, %v2549_v39 }
0x1d9c   :  { %3566 = vpow2.f32 %v2551_v12 }
0x1da6   :  { %v3567_v13 = vpop.eup %3566 }
0x1da7   :  { %v2555_v25 = vsel %vm206_vm2, %v3567_v13, 0.0 }
0x1da8   :  { %2556 = vadd.xlane.f32.xlu0 %v2555_v25 }
0x1de3   :  { %v2432_v26 = vpop.f32.mrb[84].mxu1 }
0x1de4   :  { %v4263_v27 = vadd.f32 %v2432_v26, %v4223_v7  ;;  %v3396_v28 = vpop.f32.mrb[85].mxu1 }
0x1de5   :  { %v2435_v29 = vpop.f32.mrb[86].mxu1 }
0x1de6   :  { %v4266_v30 = vadd.f32 %v2435_v29, %v4225_v10  ;;  %v3397_v33 = vpop.f32.mrb[87].mxu1 }
0x1deb   :  { %v2535_v34 = vpop.f32.mrb[88].mxu1 }
0x1dec   :  { %v2542_v35 = vmul.f32 0.35355338, %v2535_v34  ;;  %v3408_v38 = vpop.f32.mrb[89].mxu1 }
0x1ded   :  { %v2538_v40 = vpop.f32.mrb[90].mxu1 }
0x1dee   :  { %v3409_v41 = vpop.f32.mrb[91].mxu1  ;;  %v2546_v43 = vsel %vm206_vm2, %v2542_v35, -inf  ;;  %v3586_v40 = vld [vmem:[%s4373_s3] ss:$0 sm:$0xff] }
0x1def   :  { %2547 = vmax.xlane.f32.xlu1 %v2546_v43 }
0x1e00   :  { %2615 = vrot.lane.b32.xlu1 %v4097_v49, %s4399_s29 }
0x1e35   :  { %v2557_v52 = vpop.xlane.xlu0 %2556 }
0x1e7c   :  { %v2548_v44 = vpop.xlane.xlu1 %2547 }
0x1e7d   :  { %v2550_v7 = vsub.f32 %v2542_v35, %v2548_v44  ;;  %v3587_v44 = vld [vmem:[%s4374_s4] ss:$0 sm:$0xff] }
0x1e7f   :  { %v2553_v45 = vmul.f32 1.442695, %v2550_v7 }
0x1e80   :  { %v2616_v47 = vpop.permute.xlu1 %2615 }
0x1e81   :  { %3568 = vpow2.f32 %v2553_v45  ;;  %v2621_v10 = vsel %vm333_vm3, %v2616_v47, 0 }
0x1e82   :  { %3417 = vmatpush3.bf16.msra.mxu1 %v2621_v10  ;;  %3570 = vrcp.f32 %v2557_v52 }
0x1e83   :  { %3428 = vmatprep.subr.bf16.mxu1 %v3616_v15 }
0x1e8b   :  { %v3569_v48 = vpop.eup %3568 }
0x1e8c   :  { %v2558_v50 = vsel %vm206_vm2, %v3569_v48, 0.0  ;;  %v3571_v49 = vpop.eup %3570 }
0x1e8d   :  { %2559 = vadd.xlane.f32.xlu0 %v2558_v50  ;;  %v2563_v31 = vmul.f32 %v3571_v49, %v3567_v13 }
0x1e8f   :  { %v2565_v56 = vpack.c.bf16 %v2563_v31, %v2563_v31 }
0x1ea3   :  { %2567 = vrot.lane.b32.xlu0 %v4095_v16, %s4399_s29 }
0x1f1a   :  { %v2560_v53 = vpop.xlane.xlu0 %2559 }
0x1f1b   :  { %3572 = vrcp.f32 %v2560_v53 }
0x1f1e   :  { %v2568_v55 = vpop.permute.xlu0 %2567 }
0x1f1f   :  { %v2573_v32 = vsel %vm333_vm3, %v2568_v55, 0 }
0x1f20   :  { %3411 = vmatpush3.bf16.msra.mxu0 %v2573_v32 }
0x1f21   :  { %3422 = vmatprep.subr.bf16.mxu0 %v3616_v15 }
0x1f23   :  { %3413 = vmatmul.mubr.msk.bf16.vlgmr.msra.gmra.mrb[72].mxu0 %vm206_vm2, %v2565_v56 }
0x1f24   :  { %3424 = vmatprep.mubr.msk.bf16.mxu0 %vm3617_vm1, %v3616_v15  ;;  %3423 = vmatpush3.bf16.msra.mxu0 %v2669_v60 }
0x1f25   :  { %v3573_v57 = vpop.eup %3572  ;;  %3436 = vmatprep.subr.bf16.mxu0 %v3616_v15 }
0x1f26   :  { %v2564_v16 = vmul.f32 %v3573_v57, %v3569_v48 }
0x1f28   :  { %v2566_v58 = vpack.c.bf16 %v2564_v16, %v2564_v16 }
0x1f2a   :  { %3419 = vmatmul.mubr.msk.bf16.vlgmr.msra.gmra.mrb[92].mxu1 %vm206_vm2, %v2566_v58 }
0x1f2b   :  { %3429 = vmatpush3.bf16.msra.mxu1 %v3985_v17  ;;  %3432 = vmatprep.mubr.msk.bf16.mxu1 %vm3617_vm1, %v3616_v15 }
0x1f2c   :  { %3430 = vmatprep.subr.bf16.mxu1 %v3616_v15 }
0x1f2f   :  { %3431 = vmatpush3.bf16.msra.mxu1 %v3991_v18 }
0x1f30   :  { %3456 = vmatprep.subr.bf16.mxu1 %v3616_v15 }
0x1ff6   :  { %v2609_v61 = vpop.f32.mrb[72].mxu0 }
0x1ff7   :  { %v3414_v17 = vpop.f32.mrb[73].mxu0 }
0x1ff8   :  { %v2612_v62 = vpop.f32.mrb[74].mxu0 }
0x1ff9   :  { %v3415_v63 = vpop.f32.mrb[75].mxu0 }
0x1ffd   :  { %v2657_v0 = vpop.f32.mrb[92].mxu1 }
0x1ffe   :  { %v2663_v1 = vpack.c.bf16 %v2657_v0, %v2609_v61  ;;  %v3420_v51 = vpop.f32.mrb[93].mxu1 }
0x1fff   :  { %v2660_v2 = vpop.f32.mrb[94].mxu1  ;;  %v3588_v51 = vld [vmem:[%s4375_s5] ss:$0 sm:$0xff] }
0x2000   :  { %v3421_v18 = vpop.f32.mrb[95].mxu1  ;;  %3425 = vmatmul.mubr.msk.bf16.vlgmr.msra.gmra.mrb[76].mxu0 %vm206_vm2, %v2663_v1 }
0x2001   :  { %3437 = vmatpush3.bf16.msra.mxu0 %v3998_v19  ;;  %3452 = vmatprep.mubr.msk.bf16.mxu0 %vm3617_vm1, %v3616_v15 }
0x2002   :  { %3438 = vmatprep.subr.bf16.mxu0 %v3616_v15 }
0x2005   :  { %3439 = vmatpush3.bf16.msra.mxu0 %v4005_v20 }
0x2006   :  { %3440 = vmatprep.subr.bf16.mxu0 %v3616_v15 }
0x2009   :  { %3441 = vmatpush3.bf16.msra.mxu0 %v4012_v21 }
0x200a   :  { %3442 = vmatprep.subr.bf16.mxu0 %v3616_v15 }
0x200d   :  { %3443 = vmatpush3.bf16.msra.mxu0 %v4019_v22 }
0x200e   :  { %3444 = vmatprep.subr.bf16.mxu0 %v3616_v15 }
0x2011   :  { %3445 = vmatpush3.bf16.msra.mxu0 %v4026_v23  ;;  %v3585_v23 = vld [vmem:[%s4380_s10] ss:$0 sm:$0xff] }
0x2012   :  { %3446 = vmatprep.subr.bf16.mxu0 %v3616_v15 }
0x2015   :  { %3447 = vmatpush3.bf16.msra.mxu0 %v4033_v24 }
0x2016   :  { %3448 = vmatprep.subr.bf16.mxu0 %v3616_v15 }
0x2019   :  { %3449 = vmatpush3.bf16.msra.mxu0 %v4054_v46 }
0x201a   :  { %3450 = vmatprep.subr.bf16.mxu0 %v3616_v15 }
0x201d   :  { %3451 = vmatpush3.bf16.msra.mxu0 %v4061_v14 }
0x20d3   :  { %v2705_v19 = vpop.f32.mrb[76].mxu0 }
0x20d4   :  { %v2712_v20 = vadd.f32 %v2705_v19, %v4263_v27  ;;  %v3426_v21 = vpop.f32.mrb[77].mxu0 }
0x20d5   :  { %v2708_v22 = vpop.f32.mrb[78].mxu0 }
0x20d6   :  { %v2714_v54 = vadd.f32 %v3585_v23, %v2712_v20  ;;  %v2713_v24 = vadd.f32 %v2708_v22, %v4266_v30  ;;  %v3427_v3 = vpop.f32.mrb[79].mxu0  ;;  %v3589_v20 = vld [vmem:[%s4376_s6] ss:$0 sm:$0xff] }
0x20d8   :  { %v2715_v4 = vadd.f32 %v3585_v23, %v2713_v24  ;;  %v2716_v46 = vadd.f32 %v2714_v54, %v4083_v36  ;;  %v3590_v24 = vld [vmem:[%s4382_s12] ss:$0 sm:$0xff] }
0x20da   :  { %v2718_v5 = vsel %vm94_vm0, %v2716_v46, 0.0  ;;  %v2717_v14 = vadd.f32 %v2715_v4, %v4085_v37 }
0x20db   :  { %2719 = vadd.xlane.f32.xlu1 %v2718_v5 }
0x20dc   :  { %v2721_v42 = vsel %vm94_vm0, %v2717_v14, 0.0 }
0x20dd   :  { %2722 = vadd.xlane.f32.xlu0 %v2721_v42 }
0x2168   :  { %v2720_v6 = vpop.xlane.xlu1 %2719 }
0x2169   :  { %v2724_v8 = vmul.f32 0.03125, %v2720_v6 }
0x216a   :  { %v2723_v9 = vpop.xlane.xlu0 %2722 }
0x216b   :  { %v2726_v11 = vsub.f32 %v2716_v46, %v2724_v8  ;;  %v2725_v39 = vmul.f32 0.03125, %v2723_v9  ;;  %v3492_v9 = vld [vmem:[%s4385_s15] sm:$0xff]  }
0x216d   :  { %v2727_v12 = vsub.f32 %v2717_v14, %v2725_v39  ;;  %v2728_v13 = vmul.f32 %v2726_v11, %v2726_v11 }
0x216f   :  { %v2730_v25 = vsel %vm94_vm0, %v2728_v13, 0.0  ;;  %v2729_v26 = vmul.f32 %v2727_v12, %v2727_v12 }
0x2170   :  { %2731 = vadd.xlane.f32.xlu0 %v2730_v25 }
0x2171   :  { %v2733_v36 = vsel %vm94_vm0, %v2729_v26, 0.0 }
0x2172   :  { %2734 = vadd.xlane.f32.xlu1 %v2733_v36 }
0x21fd   :  { %v2732_v27 = vpop.xlane.xlu0 %2731 }
0x21fe   :  { %v2736_v37 = vmul.f32 0.03125, %v2732_v27 }
0x21ff   :  { %v2735_v28 = vpop.xlane.xlu1 %2734 }
0x2200   :  { %v2738_v29 = vadd.f32 1e-05, %v2736_v37  ;;  %v2737_v30 = vmul.f32 0.03125, %v2735_v28 }
0x2202   :  { %3574 = vrsqrt.f32 %v2738_v29  ;;  %v2739_v33 = vadd.f32 1e-05, %v2737_v30 }
0x2204   :  { %3576 = vrsqrt.f32 %v2739_v33 }
0x220c   :  { %v3575_v34 = vpop.eup %3574 }
0x220d   :  { %v2742_v35 = vmul.f32 %v3575_v34, %v2726_v11  ;;  %v3493_v11 = vld [vmem:[%s4385_s15 + $0x8] sm:$0xff]   ;;  %s3629_s15 = smov [#allocation2]  }
0x220e   :  { %v3577_v38 = vpop.eup %3576  ;;  %s2944_s25 = sshll.u32 %s3629_s15, 4  ;;  %s2945_s25 = int_to_ptr.vmem [resolvable:$true] %s2944_s25 }
0x220f   :  { %v2744_v41 = vmul.f32 %v3586_v40, %v2742_v35  ;;  %v2743_v43 = vmul.f32 %v3577_v38, %v2727_v12  ;;  %v3591_v12 = vld [vmem:[%s4384_s14] ss:$0 sm:$0xff]  ;;  %s3592_s14 = scalar_lea.vmem %s2945_s25, 256  ;;  %p3597_p1 = scmp.lt.s32.totalorder %s2945_s25, %s2945_s25 }
0x2210   :  { %p3593_p0 = scmp.ne.s32.totalorder %s2945_s25, %s3592_s14  ;;  %p3598_p2 = scmp.lt.s32.totalorder %s3592_s14, %s3592_s14 }
0x2211   :  { %v2746_v7 = vadd.f32 %v3587_v44, %v2744_v41  ;;  %v2745_v45 = vmul.f32 %v3586_v40, %v2743_v43 }
0x2212   :  { %p3599_p3 = por %p3598_p2, %p3597_p1 }
0x2213   :  { %v2748_v47 = vsel %vm94_vm0, %v2746_v7, 0.0  ;;  %v2747_v10 = vadd.f32 %v3587_v44, %v2745_v45 }
0x2214   :  { %2749 = vadd.xlane.f32.xlu0 %v2748_v47  ;;  %p3600_p4 = pnand %p3599_p3, %p3593_p0 }
0x2215   :  { %v2751_v48 = vsel %vm94_vm0, %v2747_v10, 0.0 }
0x2216   :  { %2752 = vadd.xlane.f32.xlu1 %v2751_v48 }
0x22a1   :  { %v2750_v50 = vpop.xlane.xlu0 %2749 }
0x22a2   :  { %v2754_v52 = vmul.f32 0.03125, %v2750_v50 }
0x22a3   :  { %v2753_v49 = vpop.xlane.xlu1 %2752 }
0x22a4   :  { %v2756_v53 = vsub.f32 %v2746_v7, %v2754_v52  ;;  %v2755_v31 = vmul.f32 0.03125, %v2753_v49 }
0x22a6   :  { %v2757_v55 = vsub.f32 %v2747_v10, %v2755_v31  ;;  %v2758_v32 = vmul.f32 %v2756_v53, %v2756_v53 }
0x22a8   :  { %v2760_v56 = vsel %vm94_vm0, %v2758_v32, 0.0  ;;  %v2759_v57 = vmul.f32 %v2757_v55, %v2757_v55 }
0x22a9   :  { %2761 = vadd.xlane.f32.xlu0 %v2760_v56 }
0x22aa   :  { %v2763_v16 = vsel %vm94_vm0, %v2759_v57, 0.0 }
0x22ab   :  { %2764 = vadd.xlane.f32.xlu1 %v2763_v16 }
0x2336   :  { %v2762_v58 = vpop.xlane.xlu0 %2761 }
0x2337   :  { %v2766_v59 = vmul.f32 0.03125, %v2762_v58 }
0x2338   :  { %v2765_v60 = vpop.xlane.xlu1 %2764 }
0x2339   :  { %v2768_v61 = vadd.f32 1e-05, %v2766_v59  ;;  %v2767_v17 = vmul.f32 0.03125, %v2765_v60 }
0x233b   :  { %3578 = vrsqrt.f32 %v2768_v61  ;;  %v2769_v62 = vadd.f32 1e-05, %v2767_v17 }
0x233d   :  { %3580 = vrsqrt.f32 %v2769_v62 }
0x2345   :  { %v3579_v63 = vpop.eup %3578 }
0x2346   :  { %v2772_v0 = vmul.f32 %v3579_v63, %v2756_v53 }
0x2347   :  { %v3581_v1 = vpop.eup %3580 }
0x2348   :  { %v2774_v2 = vmul.f32 %v3588_v51, %v2772_v0  ;;  %v2773_v18 = vmul.f32 %v3581_v1, %v2757_v55 }
0x234a   :  { %v2775_v19 = vmul.f32 %v3588_v51, %v2773_v18  ;;  %v2776_v21 = vadd.f32 %v3589_v20, %v2774_v2 }
0x234c   :  { %v2777_v22 = vadd.f32 %v3589_v20, %v2775_v19 }
0x234e   :  { %v2778_v23 = vpack.c.bf16 %v2777_v22, %v2776_v21 }
0x2350   :  { %3433 = vmatmul.mubr.msk.bf16.vlgmr.msra.gmra.mrb[96].mxu1 %vm94_vm0, %v2778_v23 }
0x2351   :  { %3460 = vmatprep.mubr.msk.bf16.mxu1 %vm3617_vm1, %v3616_v15  ;;  %3457 = vmatpush3.bf16.msra.mxu1 %v3492_v9 }
0x2352   :  { %3458 = vmatprep.subr.bf16.mxu1 %v3616_v15  ;;  %v3027_v15 = vld [vmem:[%s4386_s16] ss:$0 sm:$0xff] }
0x2355   :  { %3459 = vmatpush3.bf16.msra.mxu1 %v3493_v11 }
0x2423   :  { %v2816_v54 = vpop.f32.mrb[96].mxu1 }
0x2424   :  { %v2817_v3 = vadd.f32 %v3590_v24, %v2816_v54  ;;  %v3434_v4 = vpop.f32.mrb[97].mxu1 }
0x2425   :  { %v2819_v46 = vpop.f32.mrb[98].mxu1 }
0x2426   :  { %v2820_v5 = vadd.f32 %v3590_v24, %v2819_v46  ;;  %v3435_v14 = vpop.f32.mrb[99].mxu1  ;;  %v2823_v42 = vmax.f32 %v2817_v3, 0.0 }
0x2428   :  { %v2824_v6 = vmax.f32 %v2820_v5, 0.0 }
0x242a   :  { %v2825_v8 = vpack.c.bf16 %v2824_v6, %v2823_v42 }
0x242c   :  { %3453 = vmatmul.mubr.bf16.vlgmr.msra.gmra.mrb[80].mxu0 %v2825_v8 }
0x24ff   :  { %v2860_v39 = vpop.f32.mrb[80].mxu0 }
0x2500   :  { %v2861_v13 = vadd.f32 %v3591_v12, %v2860_v39  ;;  %v3454_v25 = vpop.f32.mrb[81].mxu0 }
0x2501   :  { %v2863_v26 = vpop.f32.mrb[82].mxu0 }
0x2502   :  { %v2864_v36 = vadd.f32 %v3591_v12, %v2863_v26  ;;  %v3455_v27 = vpop.f32.mrb[83].mxu0  ;;  %v2867_v37 = vadd.f32 %v2861_v13, %v2776_v21 }
0x2504   :  { %v2868_v28 = vadd.f32 %v2864_v36, %v2777_v22 }
0x2506   :  { %v2869_v29 = vpack.c.bf16 %v2868_v28, %v2867_v37 }
0x2508   :  { %3461 = vmatmul.mubr.msk.bf16.vlgmr.msra.gmra.mrb[100].mxu1 %vm94_vm0, %v2869_v29 }
0x25db   :  { %v2930_v30 = vpop.f32.mrb[100].mxu1 }
0x25dc   :  { %v2931_v33 = vadd.f32 %v3027_v15, %v2930_v30  ;;  %v3462_v34 = vpop.f32.mrb[101].mxu1 }
0x25dd   :  { %v2933_v35 = vpop.f32.mrb[102].mxu1 }
0x25de   :  { %2937 = vst [vmem:[#allocation2] sm:$0xff] %v2931_v33  ;;  %v2934_v38 = vadd.f32 %v3027_v15, %v2933_v35  ;;  %v3463_v40 = vpop.f32.mrb[103].mxu1 }
0x25e0   :  { %2938 = vst [vmem:[#allocation2 + $0x8] sm:$0xff] %v2934_v38 }
0x25e1   :  { %3603 = shalt.err (!%p3600_p4)
}
0x25e2   :  { %s3604_s27 = scalar_lea.hbm %s4387_s17, 256 }
0x25e3   :  { %p3605_p5 = scmp.ne.s32.totalorder %s4387_s17, %s3604_s27  ;;  %p3608_p6 = scmp.lt.u32.totalorder %s3604_s27, %s4387_s17 }
0x25e5   :  { %p3610_p7 = pnand %p3608_p6, %p3605_p5 }
0x25e7   :  { %3613 = shalt.err (!%p3610_p7)
}
0x25e8   :  { %s3630_s9 = smov 128   ;;  %s3631_s21 = smov 8  }
0x25e9   :  { %2950 = dma.vmem_to_hbm [thread:$0]  %s2945_s25, 256, %s4387_s17, [#allocation3], %s3630_s9, %s3630_s9, %s3631_s21  }
0x25ea   :  { %3614 = dma.done.wait [#allocation3], 256  }
0x25eb   :  { %3615 = vsyncadd [#allocation3], 4294967040 }
0x25ec   :  { %2954 = vsyncpa [#allocation3], 1 }

</bundles_post_ra>
